<compile_context>
chip_gen: v5e
topology: v5e:2x2
jax: 0.10.0
libtpu: 0.0.40
codegen_flags: <defaults>
</compile_context>

<pallas_src>
import math
from functools import partial

import jax
import jax.numpy as jnp
from jax import lax
from jax.experimental import pallas as pl
from jax.experimental.pallas import tpu as pltpu

# ---------------- configuration (small, consistent with a transformer) ------
B, S, D = 2, 8, 32          # batch, sequence, hidden
H = 4                       # attention heads
DH = D // H                 # head dim
FF = 4 * D                  # FFN hidden
HID, C = 64, 10             # mlp-head hidden, num classes
EPS = 1e-5
SCALE = 1.0 / math.sqrt(DH)

# Packed "tiny vector parameter" slab: one named row each, every row starting
# at lane 0 so in-kernel reads are plain sublane-offset slices.
VEC_ROWS = 16               # padded to a sublane multiple of 8
_ROW = dict(ln1_g=0, ln1_b=1, bo=2, ln2_g=3, ln2_b=4, b1=5, b2=6, bh1=7, bh2=8)
_WIDTH = dict(ln1_g=D, ln1_b=D, bo=D, ln2_g=D, ln2_b=D, b1=FF, b2=D,
              bh1=HID, bh2=C)

# Advisory cost estimate for XLA scheduling (zero in-kernel effect).
_FLOPS = int(2 * H * B * S * D * DH * 3          # q/k/v projections
             + 2 * H * B * S * S * DH * 2        # scores + P.V
             + 2 * H * B * S * DH * D            # out-projection
             + 2 * B * S * D * FF * 2            # FFN
             + 2 * B * D * HID + 2 * B * HID * C)  # mlp head
_TRANSCENDENTALS = int(H * B * S * S              # softmax exp
                       + H * B * S                # reciprocal
                       + B * S * FF + B * HID     # GELU tanh
                       + B * S * 2)               # rsqrt (two LayerNorms)
_BYTES = int(B * S * D * 4 + VEC_ROWS * 128 * 4
             + (3 * H * B * D * DH + H * B * DH * D
                + D * FF + FF * D + D * HID + HID * C) * 2   # bf16 weights
             + 3 * H * B * DH * 4                             # qkv biases
             + B * S * D * 4 + B * C * 4)                     # outputs


def _layernorm(x, g, b):
    mu = jnp.mean(x, axis=-1, keepdims=True)
    xc = x - mu
    var = jnp.mean(xc * xc, axis=-1, keepdims=True)
    return xc * lax.rsqrt(var + EPS) * g + b


def _gelu(x):
    # TODO(synk): tanh-approx GELU; PyTorch nn.GELU defaults to the exact erf form.
    return jax.nn.gelu(x, approximate=True)


def _row(vec, name):
    r = _ROW[name]
    return vec[r:r + 1, :_WIDTH[name]]            # (1, width), lane offset 0


# ---------------- single fused kernel (whole forward pass) -------------------
def fused_kernel(x_ref, vec_ref, wqkv_ref, bqkv_ref, wo_ref,
                 w1_ref, w2_ref, wh1_ref, wh2_ref,
                 feat_ref, logits_ref):
    vec = vec_ref[...]                            # (16, 128) f32 tiny params
    x2 = x_ref[...].reshape(B * S, D)             # (B*S, D) f32

    # ---- LN1 + head-major Q/K/V projections (bf16 MXU inputs, f32 acc) ----
    xn = _layernorm(x2, _row(vec, "ln1_g"), _row(vec, "ln1_b"))
    # Fused (head, batch) axis of size H*B; weights are pre-replicated over B
    # at init time so no in-kernel transpose / lane split is ever needed.
    xnb = jnp.broadcast_to(xn.astype(jnp.bfloat16).reshape(B, S, D),
                           (H, B, S, D)).reshape(H * B, S, D)

    def proj(i):                                  # -> (H*B, S, DH) f32
        return lax.dot_general(
            xnb, wqkv_ref[i], (((2,), (1,)), ((0,), (0,))),
            preferred_element_type=jnp.float32) + bqkv_ref[i]

    q, k, v = proj(0), proj(1), proj(2)

    # ---- attention: one batched scores dot + one batched P.V dot over H*B ----
    s = lax.dot_general(q, k, (((2,), (2,)), ((0,), (0,))),
                        preferred_element_type=jnp.float32) * SCALE   # (H*B,S,S)
    m = jnp.max(s, axis=-1, keepdims=True)
    e = jnp.exp(s - m)
    p = e * pl.reciprocal(jnp.sum(e, axis=-1, keepdims=True), approx=True)
    o = lax.dot_general(p, v, (((2,), (1,)), ((0,), (0,))),
                        preferred_element_type=jnp.float32)           # (H*B,S,DH)

    # ---- out-projection: per-head matmul then sum over heads (no concat) ----
    op = lax.dot_general(o.astype(jnp.bfloat16), wo_ref[...],
                         (((2,), (1,)), ((0,), (0,))),
                         preferred_element_type=jnp.float32)          # (H*B,S,D)
    attn = jnp.sum(op.reshape(H, B, S, D), axis=0).reshape(B * S, D)  # (B*S,D)

    # ---- residual + LN2 + FFN + residual ----
    h1 = x2 + attn + _row(vec, "bo")
    hn = _layernorm(h1, _row(vec, "ln2_g"), _row(vec, "ln2_b"))
    f = _gelu(jnp.dot(hn.astype(jnp.bfloat16), w1_ref[...],
                      preferred_element_type=jnp.float32) + _row(vec, "b1"))
    y2 = h1 + jnp.dot(f.astype(jnp.bfloat16), w2_ref[...],
                      preferred_element_type=jnp.float32) + _row(vec, "b2")

    y3 = y2.reshape(B, S, D)
    feat_ref[...] = y3                                                # base(x)

    # ---- mlp head: mean-pool over sequence -> Linear -> GELU -> Linear ----
    pooled = jnp.mean(y3, axis=1)                                     # (B, D)
    hh = _gelu(jnp.dot(pooled.astype(jnp.bfloat16), wh1_ref[...],
                       preferred_element_type=jnp.float32) + _row(vec, "bh1"))
    logits_ref[...] = (jnp.dot(hh.astype(jnp.bfloat16), wh2_ref[...],
                               preferred_element_type=jnp.float32)
                       + _row(vec, "bh2"))


def _full_spec(shape):
    zeros = (0,) * len(shape)
    return pl.BlockSpec(shape, lambda i, z=zeros: z)


def fused_transformer(params, x):
    p = params
    ins = [x, p["vec"], p["wqkv"], p["bqkv"], p["wo"],
           p["w1"], p["w2"], p["wh1"], p["wh2"]]
    feats, logits = pl.pallas_call(
        fused_kernel,
        out_shape=(jax.ShapeDtypeStruct((B, S, D), jnp.float32),
                   jax.ShapeDtypeStruct((B, C), jnp.float32)),
        grid_spec=pltpu.PrefetchScalarGridSpec(
            num_scalar_prefetch=0,
            grid=(1,),
            in_specs=[_full_spec(a.shape) for a in ins],
            out_specs=(_full_spec((B, S, D)), _full_spec((B, C)))),
        compiler_params=pltpu.CompilerParams(
            dimension_semantics=("arbitrary",)),
        cost_estimate=pl.CostEstimate(
            flops=_FLOPS, transcendentals=_TRANSCENDENTALS,
            bytes_accessed=_BYTES),
    )(*ins)
    return feats, logits


# ---------------- full forward (mirrors Transformer.forward) -----------------
def transformer_forward(params, x, return_base_features=False):
    feats, logits = fused_transformer(params, x)
    if return_base_features:
        return feats          # = self.base(x)
    return logits             # = self.head(self.base(x))


# ---------------- deterministic parameter init --------------------------------
def init_params(key):
    ks = jax.random.split(key, 18)
    dense = lambda k, fi, fo: jax.random.normal(k, (fi, fo), jnp.float32) * 0.02
    small = lambda k, n: jax.random.normal(k, (n,), jnp.float32) * 0.01

    wq, wk, wv, wo = (dense(ks[i], D, D) for i in range(4))
    w1, w2 = dense(ks[4], D, FF), dense(ks[5], FF, D)
    wh1, wh2 = dense(ks[6], D, HID), dense(ks[7], HID, C)
    bq, bk, bv = small(ks[8], D), small(ks[9], D), small(ks[10], D)

    # Pack the remaining tiny vectors into one (16, 128) slab (one DMA).
    vec_entries = dict(
        ln1_g=jnp.ones((D,), jnp.float32), ln1_b=small(ks[11], D),
        bo=small(ks[12], D),
        ln2_g=jnp.ones((D,), jnp.float32), ln2_b=small(ks[13], D),
        b1=small(ks[14], FF), b2=small(ks[15], D),
        bh1=small(ks[16], HID), bh2=small(ks[17], C),
    )
    vec = jnp.zeros((VEC_ROWS, 128), jnp.float32)
    for name, arr in vec_entries.items():
        vec = vec.at[_ROW[name], :_WIDTH[name]].set(arr)

    # Head-major weight layouts (relayout work done here, once, in plain JAX,
    # so the kernel never transposes / lane-slices).
    def w_head_major(w):   # (D, D) -> (H*B, D, DH), per-(head,batch) RHS
        w_h = w.reshape(D, H, DH).transpose(1, 0, 2)               # (H, D, DH)
        return jnp.broadcast_to(w_h[:, None], (H, B, D, DH)).reshape(H * B, D, DH)

    def b_head_major(b):   # (D,) -> (H*B, 1, DH)
        b_h = b.reshape(H, DH)
        return jnp.broadcast_to(b_h[:, None, None],
                                (H, B, 1, DH)).reshape(H * B, 1, DH)

    wo_h = wo.reshape(H, DH, D)                                     # per-head rows
    wo_hb = jnp.broadcast_to(wo_h[:, None], (H, B, DH, D)).reshape(H * B, DH, D)

    return dict(
        vec=vec,                                                    # (16,128) f32
        wqkv=jnp.stack([w_head_major(wq), w_head_major(wk),
                        w_head_major(wv)]).astype(jnp.bfloat16),    # (3,H*B,D,DH)
        bqkv=jnp.stack([b_head_major(bq), b_head_major(bk),
                        b_head_major(bv)]),                         # (3,H*B,1,DH) f32
        wo=wo_hb.astype(jnp.bfloat16),                              # (H*B,DH,D)
        w1=w1.astype(jnp.bfloat16), w2=w2.astype(jnp.bfloat16),
        wh1=wh1.astype(jnp.bfloat16), wh2=wh2.astype(jnp.bfloat16),
    )


if __name__ == "__main__":
    key = jax.random.PRNGKey(0)
    pkey, xkey = jax.random.split(key)
    params = init_params(pkey)
    x = jax.random.normal(xkey, (B, S, D), jnp.float32)

    logits = jax.jit(partial(transformer_forward, params))(x)            # (B, C)
    feats = jax.jit(partial(transformer_forward, params,
                            return_base_features=True))(x)               # (B, S, D)

    jax.block_until_ready(logits)
    jax.block_until_ready(feats)
    assert logits.shape == (B, C) and feats.shape == (B, S, D)
    assert bool(jnp.all(jnp.isfinite(logits))) and bool(jnp.all(jnp.isfinite(feats)))
    print("KERNEL_OK")
</pallas_src>

<mosaic_0001>
module attributes {stable_mosaic.version = 11 : i64} {
  func.func @fused_kernel(%arg0: i32, %arg1: memref<2x8x32xf32, #tpu.memory_space<vmem>>, %arg2: memref<16x128xf32, #tpu.memory_space<vmem>>, %arg3: memref<3x8x32x8xbf16, #tpu.memory_space<vmem>>, %arg4: memref<3x8x1x8xf32, #tpu.memory_space<vmem>>, %arg5: memref<8x8x32xbf16, #tpu.memory_space<vmem>>, %arg6: memref<32x128xbf16, #tpu.memory_space<vmem>>, %arg7: memref<128x32xbf16, #tpu.memory_space<vmem>>, %arg8: memref<32x64xbf16, #tpu.memory_space<vmem>>, %arg9: memref<64x10xbf16, #tpu.memory_space<vmem>>, %arg10: memref<2x8x32xf32, #tpu.memory_space<vmem>>, %arg11: memref<2x10xf32, #tpu.memory_space<vmem>>) attributes {dimension_semantics = [#tpu.dimension_semantics<arbitrary>], iteration_bounds = array<i64: 1>, scalar_prefetch = 0 : i64, scratch_operands = 0 : i64, tpu.core_type = #tpu.core_type<tc>, window_params = [{pipeline_mode = #tpu.pipeline_mode<synchronous>, transform_indices = @transform_0, window_bounds = array<i64: 2, 8, 32>}, {pipeline_mode = #tpu.pipeline_mode<synchronous>, transform_indices = @transform_1, window_bounds = array<i64: 16, 128>}, {pipeline_mode = #tpu.pipeline_mode<synchronous>, transform_indices = @transform_2, window_bounds = array<i64: 3, 8, 32, 8>}, {pipeline_mode = #tpu.pipeline_mode<synchronous>, transform_indices = @transform_3, window_bounds = array<i64: 3, 8, 1, 8>}, {pipeline_mode = #tpu.pipeline_mode<synchronous>, transform_indices = @transform_4, window_bounds = array<i64: 8, 8, 32>}, {pipeline_mode = #tpu.pipeline_mode<synchronous>, transform_indices = @transform_5, window_bounds = array<i64: 32, 128>}, {pipeline_mode = #tpu.pipeline_mode<synchronous>, transform_indices = @transform_6, window_bounds = array<i64: 128, 32>}, {pipeline_mode = #tpu.pipeline_mode<synchronous>, transform_indices = @transform_7, window_bounds = array<i64: 32, 64>}, {pipeline_mode = #tpu.pipeline_mode<synchronous>, transform_indices = @transform_8, window_bounds = array<i64: 64, 10>}, {pipeline_mode = #tpu.pipeline_mode<synchronous>, transform_indices = @transform_9, window_bounds = array<i64: 2, 8, 32>}, {pipeline_mode = #tpu.pipeline_mode<synchronous>, transform_indices = @transform_10, window_bounds = array<i64: 2, 10>}]} {
    %c0 = arith.constant 0 : index
    %c0_0 = arith.constant 0 : index
    %0 = vector.load %arg2[%c0, %c0_0] : memref<16x128xf32, #tpu.memory_space<vmem>>, vector<16x128xf32>
    %c0_1 = arith.constant 0 : index
    %c0_2 = arith.constant 0 : index
    %c0_3 = arith.constant 0 : index
    %1 = vector.load %arg1[%c0_1, %c0_2, %c0_3] : memref<2x8x32xf32, #tpu.memory_space<vmem>>, vector<2x8x32xf32>
    %2 = vector.shape_cast %1 : vector<2x8x32xf32> to vector<16x32xf32>
    %3 = vector.extract_strided_slice %0 {offsets = [0, 0], sizes = [1, 32], strides = [1, 1]} : vector<16x128xf32> to vector<1x32xf32>
    %4 = vector.extract_strided_slice %0 {offsets = [1, 0], sizes = [1, 32], strides = [1, 1]} : vector<16x128xf32> to vector<1x32xf32>
    %cst = arith.constant dense<0.000000e+00> : vector<16xf32>
    %5 = vector.multi_reduction <add>, %2, %cst [1] : vector<16x32xf32> to vector<16xf32>
    %6 = vector.shape_cast %5 : vector<16xf32> to vector<16x1xf32>
    %cst_4 = arith.constant 3.200000e+01 : f32
    %7 = vector.broadcast %cst_4 : f32 to vector<16x1xf32>
    %8 = arith.divf %6, %7 : vector<16x1xf32>
    %9 = vector.broadcast %8 : vector<16x1xf32> to vector<16x32xf32>
    %10 = arith.subf %2, %9 : vector<16x32xf32>
    %11 = arith.mulf %10, %10 : vector<16x32xf32>
    %cst_5 = arith.constant dense<0.000000e+00> : vector<16xf32>
    %12 = vector.multi_reduction <add>, %11, %cst_5 [1] : vector<16x32xf32> to vector<16xf32>
    %13 = vector.shape_cast %12 : vector<16xf32> to vector<16x1xf32>
    %cst_6 = arith.constant 3.200000e+01 : f32
    %14 = vector.broadcast %cst_6 : f32 to vector<16x1xf32>
    %15 = arith.divf %13, %14 : vector<16x1xf32>
    %cst_7 = arith.constant 9.99999974E-6 : f32
    %16 = vector.broadcast %cst_7 : f32 to vector<16x1xf32>
    %17 = arith.addf %15, %16 : vector<16x1xf32>
    %18 = math.rsqrt %17 : vector<16x1xf32>
    %19 = vector.broadcast %18 : vector<16x1xf32> to vector<16x32xf32>
    %20 = arith.mulf %10, %19 : vector<16x32xf32>
    %21 = vector.broadcast %3 : vector<1x32xf32> to vector<16x32xf32>
    %22 = arith.mulf %20, %21 : vector<16x32xf32>
    %23 = vector.broadcast %4 : vector<1x32xf32> to vector<16x32xf32>
    %24 = arith.addf %22, %23 : vector<16x32xf32>
    %25 = arith.truncf %24 : vector<16x32xf32> to vector<16x32xbf16>
    %26 = vector.shape_cast %25 : vector<16x32xbf16> to vector<2x8x32xbf16>
    %27 = vector.shape_cast %26 : vector<2x8x32xbf16> to vector<1x2x8x32xbf16>
    %28 = vector.broadcast %27 : vector<1x2x8x32xbf16> to vector<4x2x8x32xbf16>
    %29 = vector.shape_cast %28 : vector<4x2x8x32xbf16> to vector<8x8x32xbf16>
    %c0_8 = arith.constant 0 : index
    %c0_9 = arith.constant 0 : index
    %c0_10 = arith.constant 0 : index
    %c0_11 = arith.constant 0 : index
    %30 = vector.load %arg3[%c0_8, %c0_9, %c0_10, %c0_11] : memref<3x8x32x8xbf16, #tpu.memory_space<vmem>>, vector<1x8x32x8xbf16>
    %31 = vector.shape_cast %30 : vector<1x8x32x8xbf16> to vector<8x32x8xbf16>
    %cst_12 = arith.constant dense<0.000000e+00> : vector<8x8x8xf32>
    %32 = tpu.matmul %29, %31, %cst_12 {dimension_numbers = #tpu.dot_dimension_numbers<[2], [1], [1], [2], [0, 0, 0, 1, 1, 2], [0], [0]>} : vector<8x8x32xbf16>, vector<8x32x8xbf16>, vector<8x8x8xf32> -> vector<8x8x8xf32>
    %c0_13 = arith.constant 0 : index
    %c0_14 = arith.constant 0 : index
    %c0_15 = arith.constant 0 : index
    %c0_16 = arith.constant 0 : index
    %33 = vector.load %arg4[%c0_13, %c0_14, %c0_15, %c0_16] : memref<3x8x1x8xf32, #tpu.memory_space<vmem>>, vector<1x8x1x8xf32>
    %34 = vector.shape_cast %33 : vector<1x8x1x8xf32> to vector<8x1x8xf32>
    %35 = vector.broadcast %34 : vector<8x1x8xf32> to vector<8x8x8xf32>
    %36 = arith.addf %32, %35 : vector<8x8x8xf32>
    %c1 = arith.constant 1 : index
    %c0_17 = arith.constant 0 : index
    %c0_18 = arith.constant 0 : index
    %c0_19 = arith.constant 0 : index
    %37 = vector.load %arg3[%c1, %c0_17, %c0_18, %c0_19] : memref<3x8x32x8xbf16, #tpu.memory_space<vmem>>, vector<1x8x32x8xbf16>
    %38 = vector.shape_cast %37 : vector<1x8x32x8xbf16> to vector<8x32x8xbf16>
    %cst_20 = arith.constant dense<0.000000e+00> : vector<8x8x8xf32>
    %39 = tpu.matmul %29, %38, %cst_20 {dimension_numbers = #tpu.dot_dimension_numbers<[2], [1], [1], [2], [0, 0, 0, 1, 1, 2], [0], [0]>} : vector<8x8x32xbf16>, vector<8x32x8xbf16>, vector<8x8x8xf32> -> vector<8x8x8xf32>
    %c1_21 = arith.constant 1 : index
    %c0_22 = arith.constant 0 : index
    %c0_23 = arith.constant 0 : index
    %c0_24 = arith.constant 0 : index
    %40 = vector.load %arg4[%c1_21, %c0_22, %c0_23, %c0_24] : memref<3x8x1x8xf32, #tpu.memory_space<vmem>>, vector<1x8x1x8xf32>
    %41 = vector.shape_cast %40 : vector<1x8x1x8xf32> to vector<8x1x8xf32>
    %42 = vector.broadcast %41 : vector<8x1x8xf32> to vector<8x8x8xf32>
    %43 = arith.addf %39, %42 : vector<8x8x8xf32>
    %c2 = arith.constant 2 : index
    %c0_25 = arith.constant 0 : index
    %c0_26 = arith.constant 0 : index
    %c0_27 = arith.constant 0 : index
    %44 = vector.load %arg3[%c2, %c0_25, %c0_26, %c0_27] : memref<3x8x32x8xbf16, #tpu.memory_space<vmem>>, vector<1x8x32x8xbf16>
    %45 = vector.shape_cast %44 : vector<1x8x32x8xbf16> to vector<8x32x8xbf16>
    %cst_28 = arith.constant dense<0.000000e+00> : vector<8x8x8xf32>
    %46 = tpu.matmul %29, %45, %cst_28 {dimension_numbers = #tpu.dot_dimension_numbers<[2], [1], [1], [2], [0, 0, 0, 1, 1, 2], [0], [0]>} : vector<8x8x32xbf16>, vector<8x32x8xbf16>, vector<8x8x8xf32> -> vector<8x8x8xf32>
    %c2_29 = arith.constant 2 : index
    %c0_30 = arith.constant 0 : index
    %c0_31 = arith.constant 0 : index
    %c0_32 = arith.constant 0 : index
    %47 = vector.load %arg4[%c2_29, %c0_30, %c0_31, %c0_32] : memref<3x8x1x8xf32, #tpu.memory_space<vmem>>, vector<1x8x1x8xf32>
    %48 = vector.shape_cast %47 : vector<1x8x1x8xf32> to vector<8x1x8xf32>
    %49 = vector.broadcast %48 : vector<8x1x8xf32> to vector<8x8x8xf32>
    %50 = arith.addf %46, %49 : vector<8x8x8xf32>
    %cst_33 = arith.constant dense<0.000000e+00> : vector<8x8x8xf32>
    %51 = tpu.matmul %36, %43, %cst_33 {dimension_numbers = #tpu.dot_dimension_numbers<[2], [2], [1], [1], [0, 0, 0, 1, 1, 1], [0], [0]>} : vector<8x8x8xf32>, vector<8x8x8xf32>, vector<8x8x8xf32> -> vector<8x8x8xf32>
    %cst_34 = arith.constant 0.353553385 : f32
    %52 = vector.broadcast %cst_34 : f32 to vector<8x8x8xf32>
    %53 = arith.mulf %51, %52 : vector<8x8x8xf32>
    %cst_35 = arith.constant dense<0xFF800000> : vector<8x8xf32>
    %54 = vector.multi_reduction <maximumf>, %53, %cst_35 [2] : vector<8x8x8xf32> to vector<8x8xf32>
    %55 = vector.shape_cast %54 : vector<8x8xf32> to vector<8x8x1xf32>
    %56 = vector.broadcast %55 : vector<8x8x1xf32> to vector<8x8x8xf32>
    %57 = arith.subf %53, %56 : vector<8x8x8xf32>
    %58 = math.exp %57 : vector<8x8x8xf32>
    %cst_36 = arith.constant dense<0.000000e+00> : vector<8x8xf32>
    %59 = vector.multi_reduction <add>, %58, %cst_36 [2] : vector<8x8x8xf32> to vector<8x8xf32>
    %60 = vector.shape_cast %59 : vector<8x8xf32> to vector<8x8x1xf32>
    %61 = tpu.reciprocal %60 {approx = true} : vector<8x8x1xf32> -> vector<8x8x1xf32>
    %62 = vector.broadcast %61 : vector<8x8x1xf32> to vector<8x8x8xf32>
    %63 = arith.mulf %58, %62 : vector<8x8x8xf32>
    %cst_37 = arith.constant dense<0.000000e+00> : vector<8x8x8xf32>
    %64 = tpu.matmul %63, %50, %cst_37 {dimension_numbers = #tpu.dot_dimension_numbers<[2], [1], [1], [2], [0, 0, 0, 1, 1, 2], [0], [0]>} : vector<8x8x8xf32>, vector<8x8x8xf32>, vector<8x8x8xf32> -> vector<8x8x8xf32>
    %65 = arith.truncf %64 : vector<8x8x8xf32> to vector<8x8x8xbf16>
    %c0_38 = arith.constant 0 : index
    %c0_39 = arith.constant 0 : index
    %c0_40 = arith.constant 0 : index
    %66 = vector.load %arg5[%c0_38, %c0_39, %c0_40] : memref<8x8x32xbf16, #tpu.memory_space<vmem>>, vector<8x8x32xbf16>
    %cst_41 = arith.constant dense<0.000000e+00> : vector<8x8x32xf32>
    %67 = tpu.matmul %65, %66, %cst_41 {dimension_numbers = #tpu.dot_dimension_numbers<[2], [1], [1], [2], [0, 0, 0, 1, 1, 2], [0], [0]>} : vector<8x8x8xbf16>, vector<8x8x32xbf16>, vector<8x8x32xf32> -> vector<8x8x32xf32>
    %68 = vector.shape_cast %67 : vector<8x8x32xf32> to vector<4x2x8x32xf32>
    %cst_42 = arith.constant dense<0.000000e+00> : vector<2x8x32xf32>
    %69 = vector.multi_reduction <add>, %68, %cst_42 [0] : vector<4x2x8x32xf32> to vector<2x8x32xf32>
    %70 = vector.shape_cast %69 : vector<2x8x32xf32> to vector<16x32xf32>
    %71 = arith.addf %2, %70 : vector<16x32xf32>
    %72 = vector.extract_strided_slice %0 {offsets = [2, 0], sizes = [1, 32], strides = [1, 1]} : vector<16x128xf32> to vector<1x32xf32>
    %73 = vector.broadcast %72 : vector<1x32xf32> to vector<16x32xf32>
    %74 = arith.addf %71, %73 : vector<16x32xf32>
    %75 = vector.extract_strided_slice %0 {offsets = [3, 0], sizes = [1, 32], strides = [1, 1]} : vector<16x128xf32> to vector<1x32xf32>
    %76 = vector.extract_strided_slice %0 {offsets = [4, 0], sizes = [1, 32], strides = [1, 1]} : vector<16x128xf32> to vector<1x32xf32>
    %cst_43 = arith.constant dense<0.000000e+00> : vector<16xf32>
    %77 = vector.multi_reduction <add>, %74, %cst_43 [1] : vector<16x32xf32> to vector<16xf32>
    %78 = vector.shape_cast %77 : vector<16xf32> to vector<16x1xf32>
    %cst_44 = arith.constant 3.200000e+01 : f32
    %79 = vector.broadcast %cst_44 : f32 to vector<16x1xf32>
    %80 = arith.divf %78, %79 : vector<16x1xf32>
    %81 = vector.broadcast %80 : vector<16x1xf32> to vector<16x32xf32>
    %82 = arith.subf %74, %81 : vector<16x32xf32>
    %83 = arith.mulf %82, %82 : vector<16x32xf32>
    %cst_45 = arith.constant dense<0.000000e+00> : vector<16xf32>
    %84 = vector.multi_reduction <add>, %83, %cst_45 [1] : vector<16x32xf32> to vector<16xf32>
    %85 = vector.shape_cast %84 : vector<16xf32> to vector<16x1xf32>
    %cst_46 = arith.constant 3.200000e+01 : f32
    %86 = vector.broadcast %cst_46 : f32 to vector<16x1xf32>
    %87 = arith.divf %85, %86 : vector<16x1xf32>
    %cst_47 = arith.constant 9.99999974E-6 : f32
    %88 = vector.broadcast %cst_47 : f32 to vector<16x1xf32>
    %89 = arith.addf %87, %88 : vector<16x1xf32>
    %90 = math.rsqrt %89 : vector<16x1xf32>
    %91 = vector.broadcast %90 : vector<16x1xf32> to vector<16x32xf32>
    %92 = arith.mulf %82, %91 : vector<16x32xf32>
    %93 = vector.broadcast %75 : vector<1x32xf32> to vector<16x32xf32>
    %94 = arith.mulf %92, %93 : vector<16x32xf32>
    %95 = vector.broadcast %76 : vector<1x32xf32> to vector<16x32xf32>
    %96 = arith.addf %94, %95 : vector<16x32xf32>
    %97 = arith.truncf %96 : vector<16x32xf32> to vector<16x32xbf16>
    %c0_48 = arith.constant 0 : index
    %c0_49 = arith.constant 0 : index
    %98 = vector.load %arg6[%c0_48, %c0_49] : memref<32x128xbf16, #tpu.memory_space<vmem>>, vector<32x128xbf16>
    %cst_50 = arith.constant dense<0.000000e+00> : vector<16x128xf32>
    %99 = tpu.matmul %97, %98, %cst_50 {dimension_numbers = #tpu.dot_dimension_numbers<[1], [0], [0], [1], [0, 0, 1, 1], [], []>} : vector<16x32xbf16>, vector<32x128xbf16>, vector<16x128xf32> -> vector<16x128xf32>
    %100 = vector.extract_strided_slice %0 {offsets = [5, 0], sizes = [1, 128], strides = [1, 1]} : vector<16x128xf32> to vector<1x128xf32>
    %101 = vector.broadcast %100 : vector<1x128xf32> to vector<16x128xf32>
    %102 = arith.addf %99, %101 : vector<16x128xf32>
    %103 = arith.mulf %102, %102 : vector<16x128xf32>
    %104 = arith.mulf %102, %103 : vector<16x128xf32>
    %cst_51 = arith.constant 4.471500e-02 : f32
    %105 = vector.broadcast %cst_51 : f32 to vector<16x128xf32>
    %106 = arith.mulf %105, %104 : vector<16x128xf32>
    %107 = arith.addf %102, %106 : vector<16x128xf32>
    %cst_52 = arith.constant 0.797884583 : f32
    %108 = vector.broadcast %cst_52 : f32 to vector<16x128xf32>
    %109 = arith.mulf %108, %107 : vector<16x128xf32>
    %110 = math.tanh %109 : vector<16x128xf32>
    %cst_53 = arith.constant 1.000000e+00 : f32
    %111 = vector.broadcast %cst_53 : f32 to vector<16x128xf32>
    %112 = arith.addf %111, %110 : vector<16x128xf32>
    %cst_54 = arith.constant 5.000000e-01 : f32
    %113 = vector.broadcast %cst_54 : f32 to vector<16x128xf32>
    %114 = arith.mulf %113, %112 : vector<16x128xf32>
    %115 = arith.mulf %102, %114 : vector<16x128xf32>
    %116 = arith.truncf %115 : vector<16x128xf32> to vector<16x128xbf16>
    %c0_55 = arith.constant 0 : index
    %c0_56 = arith.constant 0 : index
    %117 = vector.load %arg7[%c0_55, %c0_56] : memref<128x32xbf16, #tpu.memory_space<vmem>>, vector<128x32xbf16>
    %cst_57 = arith.constant dense<0.000000e+00> : vector<16x32xf32>
    %118 = tpu.matmul %116, %117, %cst_57 {dimension_numbers = #tpu.dot_dimension_numbers<[1], [0], [0], [1], [0, 0, 1, 1], [], []>} : vector<16x128xbf16>, vector<128x32xbf16>, vector<16x32xf32> -> vector<16x32xf32>
    %119 = arith.addf %74, %118 : vector<16x32xf32>
    %120 = vector.extract_strided_slice %0 {offsets = [6, 0], sizes = [1, 32], strides = [1, 1]} : vector<16x128xf32> to vector<1x32xf32>
    %121 = vector.broadcast %120 : vector<1x32xf32> to vector<16x32xf32>
    %122 = arith.addf %119, %121 : vector<16x32xf32>
    %123 = vector.shape_cast %122 : vector<16x32xf32> to vector<2x8x32xf32>
    %c0_58 = arith.constant 0 : index
    %c0_59 = arith.constant 0 : index
    %c0_60 = arith.constant 0 : index
    %124 = vector.load %arg10[%c0_58, %c0_59, %c0_60] : memref<2x8x32xf32, #tpu.memory_space<vmem>>, vector<2x8x32xf32>
    tpu.vector_store %arg10[%c0_58, %c0_59, %c0_60], %123 {strides = array<i32>} : memref<2x8x32xf32, #tpu.memory_space<vmem>>, vector<2x8x32xf32>,
    %cst_61 = arith.constant dense<0.000000e+00> : vector<2x32xf32>
    %125 = vector.multi_reduction <add>, %123, %cst_61 [1] : vector<2x8x32xf32> to vector<2x32xf32>
    %cst_62 = arith.constant 8.000000e+00 : f32
    %126 = vector.broadcast %cst_62 : f32 to vector<2x32xf32>
    %127 = arith.divf %125, %126 : vector<2x32xf32>
    %128 = arith.truncf %127 : vector<2x32xf32> to vector<2x32xbf16>
    %c0_63 = arith.constant 0 : index
    %c0_64 = arith.constant 0 : index
    %129 = vector.load %arg8[%c0_63, %c0_64] : memref<32x64xbf16, #tpu.memory_space<vmem>>, vector<32x64xbf16>
    %cst_65 = arith.constant dense<0.000000e+00> : vector<2x64xf32>
    %130 = tpu.matmul %128, %129, %cst_65 {dimension_numbers = #tpu.dot_dimension_numbers<[1], [0], [0], [1], [0, 0, 1, 1], [], []>} : vector<2x32xbf16>, vector<32x64xbf16>, vector<2x64xf32> -> vector<2x64xf32>
    %131 = vector.extract_strided_slice %0 {offsets = [7, 0], sizes = [1, 64], strides = [1, 1]} : vector<16x128xf32> to vector<1x64xf32>
    %132 = vector.broadcast %131 : vector<1x64xf32> to vector<2x64xf32>
    %133 = arith.addf %130, %132 : vector<2x64xf32>
    %134 = arith.mulf %133, %133 : vector<2x64xf32>
    %135 = arith.mulf %133, %134 : vector<2x64xf32>
    %cst_66 = arith.constant 4.471500e-02 : f32
    %136 = vector.broadcast %cst_66 : f32 to vector<2x64xf32>
    %137 = arith.mulf %136, %135 : vector<2x64xf32>
    %138 = arith.addf %133, %137 : vector<2x64xf32>
    %cst_67 = arith.constant 0.797884583 : f32
    %139 = vector.broadcast %cst_67 : f32 to vector<2x64xf32>
    %140 = arith.mulf %139, %138 : vector<2x64xf32>
    %141 = math.tanh %140 : vector<2x64xf32>
    %cst_68 = arith.constant 1.000000e+00 : f32
    %142 = vector.broadcast %cst_68 : f32 to vector<2x64xf32>
    %143 = arith.addf %142, %141 : vector<2x64xf32>
    %cst_69 = arith.constant 5.000000e-01 : f32
    %144 = vector.broadcast %cst_69 : f32 to vector<2x64xf32>
    %145 = arith.mulf %144, %143 : vector<2x64xf32>
    %146 = arith.mulf %133, %145 : vector<2x64xf32>
    %147 = arith.truncf %146 : vector<2x64xf32> to vector<2x64xbf16>
    %c0_70 = arith.constant 0 : index
    %c0_71 = arith.constant 0 : index
    %148 = vector.load %arg9[%c0_70, %c0_71] : memref<64x10xbf16, #tpu.memory_space<vmem>>, vector<64x10xbf16>
    %cst_72 = arith.constant dense<0.000000e+00> : vector<2x10xf32>
    %149 = tpu.matmul %147, %148, %cst_72 {dimension_numbers = #tpu.dot_dimension_numbers<[1], [0], [0], [1], [0, 0, 1, 1], [], []>} : vector<2x64xbf16>, vector<64x10xbf16>, vector<2x10xf32> -> vector<2x10xf32>
    %150 = vector.extract_strided_slice %0 {offsets = [8, 0], sizes = [1, 10], strides = [1, 1]} : vector<16x128xf32> to vector<1x10xf32>
    %151 = vector.broadcast %150 : vector<1x10xf32> to vector<2x10xf32>
    %152 = arith.addf %149, %151 : vector<2x10xf32>
    %c0_73 = arith.constant 0 : index
    %c0_74 = arith.constant 0 : index
    %153 = vector.load %arg11[%c0_73, %c0_74] : memref<2x10xf32, #tpu.memory_space<vmem>>, vector<2x10xf32>
    tpu.vector_store %arg11[%c0_73, %c0_74], %152 {strides = array<i32>} : memref<2x10xf32, #tpu.memory_space<vmem>>, vector<2x10xf32>,
    return
  }
  func.func @transform_0(%arg0: i32) -> (i32, i32, i32) {
    %c0_i32 = arith.constant 0 : i32
    %c0_i32_0 = arith.constant 0 : i32
    %c0_i32_1 = arith.constant 0 : i32
    %c0_i32_2 = arith.constant 0 : i32
    return %c0_i32, %c0_i32_0, %c0_i32_1 : i32, i32, i32
  }
  func.func @transform_1(%arg0: i32) -> (i32, i32) {
    %c0_i32 = arith.constant 0 : i32
    %c0_i32_0 = arith.constant 0 : i32
    %c0_i32_1 = arith.constant 0 : i32
    return %c0_i32, %c0_i32_0 : i32, i32
  }
  func.func @transform_2(%arg0: i32) -> (i32, i32, i32, i32) {
    %c0_i32 = arith.constant 0 : i32
    %c0_i32_0 = arith.constant 0 : i32
    %c0_i32_1 = arith.constant 0 : i32
    %c0_i32_2 = arith.constant 0 : i32
    %c0_i32_3 = arith.constant 0 : i32
    return %c0_i32, %c0_i32_0, %c0_i32_1, %c0_i32_2 : i32, i32, i32, i32
  }
  func.func @transform_3(%arg0: i32) -> (i32, i32, i32, i32) {
    %c0_i32 = arith.constant 0 : i32
    %c0_i32_0 = arith.constant 0 : i32
    %c0_i32_1 = arith.constant 0 : i32
    %c0_i32_2 = arith.constant 0 : i32
    %c0_i32_3 = arith.constant 0 : i32
    return %c0_i32, %c0_i32_0, %c0_i32_1, %c0_i32_2 : i32, i32, i32, i32
  }
  func.func @transform_4(%arg0: i32) -> (i32, i32, i32) {
    %c0_i32 = arith.constant 0 : i32
    %c0_i32_0 = arith.constant 0 : i32
    %c0_i32_1 = arith.constant 0 : i32
    %c0_i32_2 = arith.constant 0 : i32
    return %c0_i32, %c0_i32_0, %c0_i32_1 : i32, i32, i32
  }
  func.func @transform_5(%arg0: i32) -> (i32, i32) {
    %c0_i32 = arith.constant 0 : i32
    %c0_i32_0 = arith.constant 0 : i32
    %c0_i32_1 = arith.constant 0 : i32
    return %c0_i32, %c0_i32_0 : i32, i32
  }
  func.func @transform_6(%arg0: i32) -> (i32, i32) {
    %c0_i32 = arith.constant 0 : i32
    %c0_i32_0 = arith.constant 0 : i32
    %c0_i32_1 = arith.constant 0 : i32
    return %c0_i32, %c0_i32_0 : i32, i32
  }
  func.func @transform_7(%arg0: i32) -> (i32, i32) {
    %c0_i32 = arith.constant 0 : i32
    %c0_i32_0 = arith.constant 0 : i32
    %c0_i32_1 = arith.constant 0 : i32
    return %c0_i32, %c0_i32_0 : i32, i32
  }
  func.func @transform_8(%arg0: i32) -> (i32, i32) {
    %c0_i32 = arith.constant 0 : i32
    %c0_i32_0 = arith.constant 0 : i32
    %c0_i32_1 = arith.constant 0 : i32
    return %c0_i32, %c0_i32_0 : i32, i32
  }
  func.func @transform_9(%arg0: i32) -> (i32, i32, i32) {
    %c0_i32 = arith.constant 0 : i32
    %c0_i32_0 = arith.constant 0 : i32
    %c0_i32_1 = arith.constant 0 : i32
    %c0_i32_2 = arith.constant 0 : i32
    return %c0_i32, %c0_i32_0, %c0_i32_1 : i32, i32, i32
  }
  func.func @transform_10(%arg0: i32) -> (i32, i32) {
    %c0_i32 = arith.constant 0 : i32
    %c0_i32_0 = arith.constant 0 : i32
    %c0_i32_1 = arith.constant 0 : i32
    return %c0_i32, %c0_i32_0 : i32, i32
  }
}

</mosaic_0001>

<bundles_post_ra>
// kernel: transformer_forward.1
= control target key start
LH: loop header
LB: loop body
LE: loop exit
PB: predicated region body
PF: predicated region fallthrough
CT: control target
= control target key end

     0   :  { %16 = vsyncpa [#allocation3], 0  ;;  %s3137_s0 = inlined_call_operand.hbm [shape: f32[2,8,32], index: 0, kind: input, shape index: {}]   ;;  %s3138_s1 = inlined_call_operand.hbm [shape: f32[16,128], index: 1, kind: input, shape index: {}]   ;;  %s3139_s2 = inlined_call_operand.hbm [shape: bf16[3,8,32,8], index: 2, kind: input, shape index: {}]   ;;  %s3140_s3 = inlined_call_operand.hbm [shape: f32[3,8,1,8], index: 3, kind: input, shape index: {}]   ;;  %s3141_s4 = inlined_call_operand.hbm [shape: bf16[8,8,32], index: 4, kind: input, shape index: {}]   ;;  %s3142_s5 = inlined_call_operand.hbm [shape: bf16[32,128], index: 5, kind: input, shape index: {}]   ;;  %s3143_s6 = inlined_call_operand.hbm [shape: bf16[128,32], index: 6, kind: input, shape index: {}]   ;;  %s3144_s7 = inlined_call_operand.hbm [shape: bf16[32,64], index: 7, kind: input, shape index: {}]   ;;  %s3145_s8 = inlined_call_operand.hbm [shape: bf16[64,10], index: 8, kind: input, shape index: {}]   ;;  %s3146_s9 = inlined_call_operand.hbm [shape: f32[2,8,32], index: 9, kind: output, shape index: {0}]   ;;  %s3147_s10 = inlined_call_operand.hbm [shape: f32[2,10], index: 10, kind: output, shape index: {1}]  }
   0x1   :  { %17 = vsyncpa [#allocation6], 0 }
   0x2   :  { %18 = vsyncpa [#allocation9], 0 }
   0x3   :  { %19 = vsyncpa [#allocation12], 0 }
   0x4   :  { %20 = vsyncpa [#allocation15], 0 }
   0x5   :  { %21 = vsyncpa [#allocation4], 0 }
   0x6   :  { %22 = vsyncpa [#allocation19], 0  ;;  %s40_s15 = sshll.u32 %s3138_s1, 4  ;;  %s2828_s16 = smov [#allocation5]   ;;  %s41_s15 = int_to_ptr.hbm [resolvable:$true] %s40_s15 }
   0x7   :  { %s42_s17 = sshll.u32 %s2828_s16, 4  ;;  %s66_s20 = sshll.u32 %s3140_s3, 4  ;;  %s43_s17 = int_to_ptr.vmem [resolvable:$true] %s42_s17  ;;  %s67_s20 = int_to_ptr.hbm [resolvable:$true] %s66_s20 }
   0x8   :  { %s2829_s21 = smov 128   ;;  %s2830_s22 = smov 8  }
   0x9   :  { %48 = dma.hbm_to_vmem [thread:$0]  %s41_s15, 256, %s43_s17, [#allocation6], %s2829_s21, %s2829_s21, %s2830_s22  }
   0xa   :  { %s2831_s23 = smov [#allocation8]   ;;  %s2832_s25 = smov 16  }
   0xb   :  { %s68_s24 = sshll.u32 %s2831_s23, 4  ;;  %s2833_s1 = smov 1   ;;  %s69_s24 = int_to_ptr.vmem [resolvable:$true] %s68_s24 }
   0xc   :  { %74 = dma.hbm_to_vmem [thread:$0]  %s67_s20, 384, %s69_s24, [#allocation9], %s2832_s25, %s2832_s25, %s2833_s1  }
   0xd   :  { %s92_s28 = sshll.u32 %s3142_s5, 4  ;;  %s2834_s29 = smov [#allocation11]   ;;  %s93_s28 = int_to_ptr.hbm [resolvable:$true] %s92_s28 }
   0xe   :  { %s94_s3 = sshll.u32 %s2834_s29, 4  ;;  %s118_s12 = sshll.u32 %s3144_s7, 4  ;;  %s95_s3 = int_to_ptr.vmem [resolvable:$true] %s94_s3  ;;  %s119_s12 = int_to_ptr.hbm [resolvable:$true] %s118_s12 }
   0xf   :  { %s2835_s13 = smov 64   ;;  %s2836_s14 = smov 4  }
  0x10   :  { %100 = dma.hbm_to_vmem [thread:$0]  %s93_s28, 256, %s95_s3, [#allocation12], %s2835_s13, %s2835_s13, %s2836_s14  }
  0x11   :  { %s2837_s15 = smov [#allocation14]   ;;  %s27_s5 = sshll.u32 %s3137_s0, 4  ;;  %s28_s5 = int_to_ptr.hbm [resolvable:$true] %s27_s5 }
  0x12   :  { %s120_s16 = sshll.u32 %s2837_s15, 4  ;;  %s53_s20 = sshll.u32 %s3139_s2, 4  ;;  %s121_s16 = int_to_ptr.vmem [resolvable:$true] %s120_s16  ;;  %s54_s20 = int_to_ptr.hbm [resolvable:$true] %s53_s20 }
  0x13   :  { %126 = dma.hbm_to_vmem [thread:$0]  %s119_s12, 256, %s121_s16, [#allocation15], %s2835_s13, %s2835_s13, %s2836_s14  }
  0x14   :  { %s2838_s23 = smov [#allocation2]   ;;  %s2839_s25 = smov [#allocation7]  }
  0x15   :  { %s29_s24 = sshll.u32 %s2838_s23, 4  ;;  %s55_s0 = sshll.u32 %s2839_s25, 4  ;;  %s30_s24 = int_to_ptr.vmem [resolvable:$true] %s29_s24  ;;  %s56_s0 = int_to_ptr.vmem [resolvable:$true] %s55_s0 }
  0x16   :  { %35 = dma.hbm_to_vmem [thread:$0]  %s28_s5, 256, %s30_s24, [#allocation3], %s2829_s21, %s2829_s21, %s2830_s22  }
  0x17   :  { %s79_s27 = sshll.u32 %s3141_s4, 4  ;;  %s105_s29 = sshll.u32 %s3143_s6, 4  ;;  %s80_s27 = int_to_ptr.hbm [resolvable:$true] %s79_s27  ;;  %s106_s29 = int_to_ptr.hbm [resolvable:$true] %s105_s29 }
  0x18   :  { %61 = dma.hbm_to_vmem [thread:$0]  %s54_s20, 6144, %s56_s0, [#allocation6], %s2835_s13, %s2835_s13, %s2836_s14  }
  0x19   :  { %s2840_s3 = smov [#allocation10]   ;;  %s2841_s11 = smov [#allocation13]  }
  0x1a   :  { %s81_s30 = sshll.u32 %s2840_s3, 4  ;;  %s107_s4 = sshll.u32 %s2841_s11, 4  ;;  %s82_s30 = int_to_ptr.vmem [resolvable:$true] %s81_s30  ;;  %s108_s4 = int_to_ptr.vmem [resolvable:$true] %s107_s4 }
  0x1b   :  { %87 = dma.hbm_to_vmem [thread:$0]  %s80_s27, 512, %s82_s30, [#allocation9], %s2835_s13, %s2835_s13, %s2836_s14  }
  0x1c   :  { %s131_s16 = sshll.u32 %s3145_s8, 4  ;;  %s2842_s6 = smov [#allocation16]   ;;  %s132_s16 = int_to_ptr.hbm [resolvable:$true] %s131_s16 }
  0x1d   :  { %113 = dma.hbm_to_vmem [thread:$0]  %s106_s29, 1024, %s108_s4, [#allocation12], %s2835_s13, %s2835_s13, %s2836_s14  }
  0x1e   :  { %s133_s17 = sshll.u32 %s2842_s6, 4  ;;  %s134_s17 = int_to_ptr.vmem [resolvable:$true] %s133_s17 }
  0x1f   :  { %139 = dma.hbm_to_vmem [thread:$0]  %s132_s16, 512, %s134_s17, [#allocation15], %s2835_s13, %s2835_s13, %s2836_s14  }
  0x20   :  { %2814 = dma.done.wait [#allocation3], 256  }
  0x21   :  { %2815 = vsyncadd [#allocation3], 4294967040 }
  0x22   :  { %2816 = dma.done.wait [#allocation6], 6400  }
  0x23   :  { %2817 = vsyncadd [#allocation6], 4294960896 }
  0x24   :  { %2818 = dma.done.wait [#allocation9], 896  }
  0x25   :  { %2819 = vsyncadd [#allocation9], 4294966400 }
  0x26   :  { %2820 = dma.done.wait [#allocation12], 1280  }
  0x27   :  { %2821 = vsyncadd [#allocation12], 4294966016 }
  0x28   :  { %2822 = dma.done.wait [#allocation15], 768  }
  0x29   :  { %2823 = vsyncadd [#allocation15], 4294966528  ;;  %vm181_vm0 = vcmask 261120   ;;  %v179_v0 = vld [vmem:[#allocation2] sm:$0xff]  ;;  %v180_v1 = vld [vmem:[#allocation2 + $0x8] sm:$0xff]  ;;  %v2843_v4 = vmov 32.0  }
  0x2a   :  { %v182_v2 = vsel %vm181_vm0, %v179_v0, 0.0  ;;  %v185_v3 = vsel %vm181_vm0, %v180_v1, 0.0  ;;  %2497 = vrcp.f32 %v2843_v4  ;;  %v2391_v21 = vld [vmem:[#allocation7 + $0x8] sm:$0xff]  ;;  %v2390_v23 = vld [vmem:[#allocation7] sm:$0xff]  ;;  %v2393_v25 = vld [vmem:[#allocation7 + $0x18] sm:$0xff]  ;;  %vm1043_vm8 = vcmask 64512  }
  0x2b   :  { %183 = vadd.xlane.f32.xlu0 %v182_v2  ;;  %v2395_v22 = vld [vmem:[#allocation7 + $0x28] sm:$0xff]  ;;  %326 = vmatpush.bf16.msra.mxu0 %v2391_v21  ;;  %v2394_v24 = vld [vmem:[#allocation7 + $0x20] sm:$0xff]  ;;  %v2397_v26 = vld [vmem:[#allocation7 + $0x38] sm:$0xff]  ;;  %vm1551_vm9 = vcmask 1043456   ;;  %s2845_s8 = smov [#allocation17]   ;;  %s2042_s5 = sshll.u32 %s3146_s9, 4  ;;  %s2043_s5 = int_to_ptr.hbm [resolvable:$true] %s2042_s5 }
  0x2c   :  { %379 = vmatpush.bf16.msra.mxu2 %v2395_v22  ;;  %354 = vmatpush.bf16.msra.mxu1 %v2393_v25  ;;  %v2392_v29 = vld [vmem:[#allocation7 + $0x10] sm:$0xff]  ;;  %v2399_v32 = vld [vmem:[#allocation7 + $0x48] sm:$0xff]  ;;  %v2398_v35 = vld [vmem:[#allocation7 + $0x40] sm:$0xff]  ;;  %s2040_s13 = sshll.u32 %s2845_s8, 4  ;;  %s2846_s7 = smov [#allocation18]   ;;  %s2041_s13 = int_to_ptr.vmem [resolvable:$true] %s2040_s13 }
  0x2d   :  { %404 = vmatpush.bf16.msra.mxu3 %v2397_v26  ;;  %v2396_v30 = vld [vmem:[#allocation7 + $0x30] sm:$0xff]  ;;  %v2403_v33 = vld [vmem:[#allocation7 + $0x68] sm:$0xff]  ;;  %v2402_v36 = vld [vmem:[#allocation7 + $0x60] sm:$0xff]  ;;  %s2054_s19 = sshll.u32 %s2846_s7, 4  ;;  %s2056_s24 = sshll.u32 %s3147_s10, 4  ;;  %s2055_s19 = int_to_ptr.vmem [resolvable:$true] %s2054_s19  ;;  %s2057_s24 = int_to_ptr.hbm [resolvable:$true] %s2056_s24 }
  0x2e   :  { %v2401_v42 = vld [vmem:[#allocation7 + $0x58] sm:$0xff]  ;;  %v2400_v45 = vld [vmem:[#allocation7 + $0x50] sm:$0xff]  ;;  %v2407_v62 = vld [vmem:[#allocation7 + $0x88] sm:$0xff] }
  0x2f   :  { %327 = vmatpush.bf16.msra.mxu0 %v2390_v23  ;;  %v2405_v43 = vld [vmem:[#allocation7 + $0x78] sm:$0xff]  ;;  %v2404_v46 = vld [vmem:[#allocation7 + $0x70] sm:$0xff]  ;;  %v2411_v63 = vld [vmem:[#allocation7 + $0xa8] sm:$0xff] }
  0x30   :  { %v2498_v5 = vpop.eup %2497  ;;  %380 = vmatpush.bf16.msra.mxu2 %v2394_v24  ;;  %355 = vmatpush.bf16.msra.mxu1 %v2392_v29  ;;  %v2971_v47 = vld [vmem:[#allocation5] sm:$0xff]  ;;  %v2410_v4 = vld [vmem:[#allocation7 + $0xa0] sm:$0xff]  ;;  %v2423_v21 = vld [vmem:[#allocation7 + $0x108] sm:$0xff] }
  0x31   :  { %v189_v6 = vmul.f32 32.0, %v2498_v5  ;;  %vm193_vm1 = vweird.f32 %v2498_v5  ;;  %405 = vmatpush.bf16.msra.mxu3 %v2396_v30  ;;  %v233_v52 = vperm.slane %v2971_v47, 0  ;;  %v236_v56 = vperm.slane %v2971_v47, 1  ;;  %v2427_v22 = vld [vmem:[#allocation7 + $0x128] sm:$0xff]  ;;  %v2422_v23 = vld [vmem:[#allocation7 + $0x100] sm:$0xff]  ;;  %v2425_v25 = vld [vmem:[#allocation7 + $0x118] sm:$0xff] }
  0x32   :  { %v2426_v24 = vld [vmem:[#allocation7 + $0x120] sm:$0xff]  ;;  %v2429_v26 = vld [vmem:[#allocation7 + $0x138] sm:$0xff]  ;;  %v2431_v29 = vld [vmem:[#allocation7 + $0x148] sm:$0xff] }
  0x33   :  { %186 = vadd.xlane.f32.xlu0 %v185_v3  ;;  %v190_v7 = vsub.f32 1.0, %v189_v6  ;;  %429 = vmatpush.bf16.msrb.mxu0 %v2399_v32  ;;  %v2406_v3 = vld [vmem:[#allocation7 + $0x80] sm:$0xff]  ;;  %v2435_v30 = vld [vmem:[#allocation7 + $0x168] sm:$0xff] }
  0x34   :  { %479 = vmatpush.bf16.msrb.mxu2 %v2403_v33  ;;  %454 = vmatpush.bf16.msrb.mxu1 %v2401_v42  ;;  %v2434_v32 = vld [vmem:[#allocation7 + $0x160] sm:$0xff]  ;;  %v2433_v33 = vld [vmem:[#allocation7 + $0x158] sm:$0xff] }
  0x35   :  { %v191_v8 = vmul.f32 %v2498_v5, %v190_v7  ;;  %504 = vmatpush.bf16.msrb.mxu3 %v2405_v43  ;;  %v2409_v7 = vld [vmem:[#allocation7 + $0x98] sm:$0xff] }
  0x37   :  { %v192_v9 = vadd.f32 %v2498_v5, %v191_v8  ;;  %430 = vmatpush.bf16.msrb.mxu0 %v2398_v35  ;;  %v2413_v8 = vld [vmem:[#allocation7 + $0xb8] sm:$0xff]  ;;  %v2432_v35 = vld [vmem:[#allocation7 + $0x150] sm:$0xff] }
  0x38   :  { %480 = vmatpush.bf16.msrb.mxu2 %v2402_v36  ;;  %455 = vmatpush.bf16.msrb.mxu1 %v2400_v45  ;;  %v2436_v36 = vld [vmem:[#allocation7 + $0x170] sm:$0xff] }
  0x39   :  { %v2955_v10 = vsel %vm193_vm1, %v2498_v5, %v192_v9  ;;  %505 = vmatpush.bf16.msrb.mxu3 %v2404_v46 }
  0x9e   :  { %v184_v11 = vpop.xlane.xlu0 %183 }
  0x9f   :  { %v195_v12 = vmul.f32 %v2955_v10, %v184_v11  ;;  %v2408_v11 = vld [vmem:[#allocation7 + $0x90] sm:$0xff] }
  0xa1   :  { %v2958_v13 = vsub.f32 %v179_v0, %v195_v12  ;;  %v2412_v12 = vld [vmem:[#allocation7 + $0xb0] sm:$0xff] }
  0xa3   :  { %v199_v14 = vmul.f32 %v2958_v13, %v2958_v13 }
  0xa5   :  { %v201_v15 = vsel %vm181_vm0, %v199_v14, 0.0  ;;  %v2419_v14 = vld [vmem:[#allocation7 + $0xe8] sm:$0xff] }
  0xa6   :  { %202 = vadd.xlane.f32.xlu1 %v201_v15  ;;  %v187_v16 = vpop.xlane.xlu0 %186  ;;  %v2414_v15 = vld [vmem:[#allocation7 + $0xc0] sm:$0xff] }
  0xa7   :  { %v196_v17 = vmul.f32 %v2955_v10, %v187_v16  ;;  %v2418_v16 = vld [vmem:[#allocation7 + $0xe0] sm:$0xff] }
  0xa9   :  { %v2964_v18 = vsub.f32 %v180_v1, %v196_v17  ;;  %v2417_v17 = vld [vmem:[#allocation7 + $0xd8] sm:$0xff] }
  0xab   :  { %v200_v19 = vmul.f32 %v2964_v18, %v2964_v18 }
  0xad   :  { %v204_v20 = vsel %vm181_vm0, %v200_v19, 0.0  ;;  %v2416_v19 = vld [vmem:[#allocation7 + $0xd0] sm:$0xff] }
  0xae   :  { %205 = vadd.xlane.f32.xlu1 %v204_v20  ;;  %v2420_v20 = vld [vmem:[#allocation7 + $0xf0] sm:$0xff] }
 0x119   :  { %v203_v27 = vpop.xlane.xlu1 %202 }
 0x11a   :  { %v207_v28 = vmul.f32 %v203_v27, %v2955_v10  ;;  %v2424_v27 = vld [vmem:[#allocation7 + $0x110] sm:$0xff] }
 0x11c   :  { %v209_v31 = vadd.f32 1e-05, %v207_v28  ;;  %v2428_v28 = vld [vmem:[#allocation7 + $0x130] sm:$0xff] }
 0x11e   :  { %2499 = vrsqrt.f32 %v209_v31  ;;  %vm217_vm3 = vweird.f32 %v209_v31 }
 0x121   :  { %v206_v34 = vpop.xlane.xlu1 %205 }
 0x122   :  { %v208_v37 = vmul.f32 %v206_v34, %v2955_v10  ;;  %v2437_v34 = vld [vmem:[#allocation7 + $0x178] sm:$0xff] }
 0x124   :  { %v2500_v38 = vpop.eup %2499  ;;  %v210_v39 = vadd.f32 1e-05, %v208_v37 }
 0x125   :  { %v212_v40 = vmul.f32 %v2500_v38, %v209_v31  ;;  %vm218_vm2 = vweird.f32 %v2500_v38  ;;  %v2430_v31 = vld [vmem:[#allocation7 + $0x140] sm:$0xff] }
 0x126   :  { %2501 = vrsqrt.f32 %v210_v39  ;;  %vm219_vm4 = vmor %vm217_vm3, %vm218_vm2  ;;  %vm227_vm6 = vweird.f32 %v210_v39  ;;  %vm1943_vm2 = vcmask 1041409   ;;  %vm2034_vm3 = vcmask 74752  }
 0x127   :  { %v213_v41 = vmul.f32 %v2500_v38, %v212_v40 }
 0x129   :  { %v214_v44 = vmul.f32 0.5, %v213_v41 }
 0x12b   :  { %v215_v48 = vsub.f32 1.5, %v214_v44 }
 0x12c   :  { %v2502_v49 = vpop.eup %2501 }
 0x12d   :  { %v216_v50 = vmul.f32 %v2500_v38, %v215_v48  ;;  %v222_v51 = vmul.f32 %v2502_v49, %v210_v39  ;;  %vm228_vm5 = vweird.f32 %v2502_v49 }
 0x12e   :  { %vm229_vm7 = vmor %vm227_vm6, %vm228_vm5 }
 0x12f   :  { %v220_v53 = vsel %vm219_vm4, %v2500_v38, %v216_v50  ;;  %v223_v54 = vmul.f32 %v2502_v49, %v222_v51  ;;  %v2481_v50 = vld [vmem:[#allocation8 + $0x8] ss:$0 sm:$0xff] }
 0x130   :  { %v231_v55 = vmul.f32 %v220_v53, %v2958_v13  ;;  %v2415_v13 = vld [vmem:[#allocation7 + $0xc8] sm:$0xff]  ;;  %v2473_v53 = vld [vmem:[#allocation8] ss:$0 sm:$0xff] }
 0x131   :  { %v224_v57 = vmul.f32 0.5, %v223_v54 }
 0x132   :  { %v234_v58 = vmul.f32 %v233_v52, %v231_v55 }
 0x133   :  { %v225_v59 = vsub.f32 1.5, %v224_v57  ;;  %v2482_v57 = vld [vmem:[#allocation8 + $0xa] ss:$0 sm:$0xff] }
 0x134   :  { %v237_v60 = vadd.f32 %v236_v56, %v234_v58 }
 0x135   :  { %v226_v61 = vmul.f32 %v2502_v49, %v225_v59  ;;  %v2483_v59 = vld [vmem:[#allocation8 + $0x9] ss:$0 sm:$0xff] }
 0x136   :  { %v2976_v0 = vpack.c.bf16 %v237_v60, %v237_v60  ;;  %v2474_v60 = vld [vmem:[#allocation8 + $0x2] ss:$0 sm:$0xff] }
 0x137   :  { %v230_v1 = vsel %vm229_vm7, %v2502_v49, %v226_v61 }
 0x138   :  { %v232_v2 = vmul.f32 %v230_v1, %v2964_v18  ;;  %2083 = vmatmul.msk.bf16.vlgmr.msra.gmra.mxu0 %vm181_vm0, %v2976_v0  ;;  %2101 = vmatmul.msk.bf16.vlgmr.msra.gmra.mxu2 %vm181_vm0, %v2976_v0  ;;  %v2421_v18 = vld [vmem:[#allocation7 + $0xf8] sm:$0xff] }
 0x139   :  { %595 = vmatpush.bf16.msra.mxu0 %v2407_v62  ;;  %645 = vmatpush.bf16.msra.mxu2 %v2411_v63 }
 0x13a   :  { %v235_v5 = vmul.f32 %v233_v52, %v232_v2 }
 0x13c   :  { %v238_v6 = vadd.f32 %v236_v56, %v235_v5  ;;  %v2484_v5 = vld [vmem:[#allocation8 + $0xb] ss:$0 sm:$0xff] }
 0x13d   :  { %596 = vmatpush.bf16.msra.mxu0 %v2406_v3  ;;  %646 = vmatpush.bf16.msra.mxu2 %v2410_v4 }
 0x13e   :  { %v2983_v9 = vpack.c.bf16 %v238_v6, %v238_v6 }
 0x140   :  { %2092 = vmatmul.msk.bf16.vlgmr.msra.gmra.mxu1 %vm181_vm0, %v2983_v9  ;;  %2110 = vmatmul.msk.bf16.vlgmr.msra.gmra.mxu3 %vm181_vm0, %v2983_v9 }
 0x141   :  { %620 = vmatpush.bf16.msra.mxu1 %v2409_v7  ;;  %670 = vmatpush.bf16.msra.mxu3 %v2413_v8  ;;  %v2485_v7 = vld [vmem:[#allocation8 + $0xc] ss:$0 sm:$0xff]  ;;  %v2476_v8 = vld [vmem:[#allocation8 + $0x3] ss:$0 sm:$0xff] }
 0x145   :  { %621 = vmatpush.bf16.msra.mxu1 %v2408_v11  ;;  %671 = vmatpush.bf16.msra.mxu3 %v2412_v12 }
 0x148   :  { %2119 = vmatmul.msk.bf16.vlgmr.msrb.gmra.mxu0 %vm181_vm0, %v2976_v0  ;;  %2137 = vmatmul.msk.bf16.vlgmr.msrb.gmra.mxu2 %vm181_vm0, %v2976_v0 }
 0x149   :  { %695 = vmatpush.bf16.msrb.mxu0 %v2415_v13  ;;  %745 = vmatpush.bf16.msrb.mxu2 %v2419_v14  ;;  %v2477_v13 = vld [vmem:[#allocation8 + $0x4] ss:$0 sm:$0xff] }
 0x14d   :  { %696 = vmatpush.bf16.msrb.mxu0 %v2414_v15  ;;  %746 = vmatpush.bf16.msrb.mxu2 %v2418_v16 }
 0x150   :  { %2128 = vmatmul.msk.bf16.vlgmr.msrb.gmra.mxu1 %vm181_vm0, %v2983_v9  ;;  %2146 = vmatmul.msk.bf16.vlgmr.msrb.gmra.mxu3 %vm181_vm0, %v2983_v9 }
 0x151   :  { %720 = vmatpush.bf16.msrb.mxu1 %v2417_v17  ;;  %770 = vmatpush.bf16.msrb.mxu3 %v2421_v18  ;;  %v2486_v18 = vld [vmem:[#allocation8 + $0xe] ss:$0 sm:$0xff] }
 0x155   :  { %721 = vmatpush.bf16.msrb.mxu1 %v2416_v19  ;;  %771 = vmatpush.bf16.msrb.mxu3 %v2420_v20  ;;  %v2487_v20 = vld [vmem:[#allocation8 + $0xd] ss:$0 sm:$0xff] }
 0x158   :  { %2155 = vmatmul.msk.bf16.vlgmr.msra.gmra.mxu0 %vm181_vm0, %v2976_v0  ;;  %2173 = vmatmul.msk.bf16.vlgmr.msra.gmra.mxu2 %vm181_vm0, %v2976_v0 }
 0x159   :  { %861 = vmatpush.bf16.msra.mxu0 %v2423_v21  ;;  %911 = vmatpush.bf16.msra.mxu2 %v2427_v22  ;;  %v2478_v21 = vld [vmem:[#allocation8 + $0x6] ss:$0 sm:$0xff] }
 0x15d   :  { %862 = vmatpush.bf16.msra.mxu0 %v2422_v23  ;;  %912 = vmatpush.bf16.msra.mxu2 %v2426_v24 }
 0x160   :  { %2164 = vmatmul.msk.bf16.vlgmr.msra.gmra.mxu1 %vm181_vm0, %v2983_v9  ;;  %2182 = vmatmul.msk.bf16.vlgmr.msra.gmra.mxu3 %vm181_vm0, %v2983_v9 }
 0x161   :  { %886 = vmatpush.bf16.msra.mxu1 %v2425_v25  ;;  %936 = vmatpush.bf16.msra.mxu3 %v2429_v26  ;;  %v2479_v25 = vld [vmem:[#allocation8 + $0x5] ss:$0 sm:$0xff] }
 0x165   :  { %887 = vmatpush.bf16.msra.mxu1 %v2424_v27  ;;  %937 = vmatpush.bf16.msra.mxu3 %v2428_v28 }
 0x168   :  { %2191 = vmatmul.msk.bf16.vlgmr.msrb.gmra.mxu0 %vm181_vm0, %v2976_v0  ;;  %2209 = vmatmul.msk.bf16.vlgmr.msrb.gmra.mxu2 %vm181_vm0, %v2976_v0 }
 0x169   :  { %961 = vmatpush.bf16.msrb.mxu0 %v2431_v29  ;;  %1011 = vmatpush.bf16.msrb.mxu2 %v2435_v30  ;;  %v2488_v30 = vld [vmem:[#allocation8 + $0xf] ss:$0 sm:$0xff] }
 0x16d   :  { %962 = vmatpush.bf16.msrb.mxu0 %v2430_v31  ;;  %1012 = vmatpush.bf16.msrb.mxu2 %v2434_v32  ;;  %v2489_v32 = vld [vmem:[#allocation8 + $0x10] ss:$0 sm:$0xff] }
 0x170   :  { %2200 = vmatmul.msk.bf16.vlgmr.msrb.gmra.mxu1 %vm181_vm0, %v2983_v9  ;;  %2218 = vmatmul.msk.bf16.vlgmr.msrb.gmra.mxu3 %vm181_vm0, %v2983_v9 }
 0x171   :  { %986 = vmatpush.bf16.msrb.mxu1 %v2433_v33  ;;  %1036 = vmatpush.bf16.msrb.mxu3 %v2437_v34  ;;  %v2480_v33 = vld [vmem:[#allocation8 + $0x7] ss:$0 sm:$0xff] }
 0x175   :  { %987 = vmatpush.bf16.msrb.mxu1 %v2432_v35  ;;  %1037 = vmatpush.bf16.msrb.mxu3 %v2436_v36 }
 0x178   :  { %2227 = vmatmul.msk.bf16.vlgmr.msra.gmra.mxu0 %vm181_vm0, %v2976_v0  ;;  %2245 = vmatmul.msk.bf16.vlgmr.msra.gmra.mxu2 %vm181_vm0, %v2976_v0 }
 0x180   :  { %2236 = vmatmul.msk.bf16.vlgmr.msra.gmra.mxu1 %vm181_vm0, %v2983_v9  ;;  %2254 = vmatmul.msk.bf16.vlgmr.msra.gmra.mxu3 %vm181_vm0, %v2983_v9 }
 0x188   :  { %2263 = vmatmul.msk.bf16.vlgmr.msrb.gmra.mxu0 %vm181_vm0, %v2976_v0  ;;  %2281 = vmatmul.msk.bf16.vlgmr.msrb.gmra.mxu2 %vm181_vm0, %v2976_v0  ;;  %v2475_v0 = vld [vmem:[#allocation8 + $0x1] ss:$0 sm:$0xff] }
 0x190   :  { %2272 = vmatmul.msk.bf16.vlgmr.msrb.gmra.mxu1 %vm181_vm0, %v2983_v9  ;;  %2290 = vmatmul.msk.bf16.vlgmr.msrb.gmra.mxu3 %vm181_vm0, %v2983_v9 }
 0x1b5   :  { %v329_v37 = vpop.f32.mrf.mxu0 }
 0x1b6   :  { %v330_v58 = vadd.f32 %v2473_v53, %v329_v37 }
 0x1bb   :  { %v382_v38 = vpop.f32.mrf.mxu2 }
 0x1bc   :  { %v383_v4 = vadd.f32 %v2474_v60, %v382_v38 }
 0x1bd   :  { %v331_v39 = vpop.f32.mrf.mxu0  ;;  %v357_v40 = vpop.f32.mrf.mxu1 }
 0x1be   :  { %v358_v6 = vadd.f32 %v2475_v0, %v357_v40 }
 0x1c3   :  { %v384_v41 = vpop.f32.mrf.mxu2  ;;  %v407_v42 = vpop.f32.mrf.mxu3 }
 0x1c4   :  { %v408_v17 = vadd.f32 %v2476_v8, %v407_v42  ;;  %v2490_v41 = vld [vmem:[#allocation8 + $0x12] ss:$0 sm:$0xff]  ;;  %v2491_v42 = vld [vmem:[#allocation8 + $0x11] ss:$0 sm:$0xff] }
 0x1c5   :  { %v359_v43 = vpop.f32.mrf.mxu1  ;;  %v432_v44 = vpop.f32.mrf.mxu0 }
 0x1c6   :  { %v433_v19 = vadd.f32 %v2477_v13, %v432_v44 }
 0x1cb   :  { %v409_v45 = vpop.f32.mrf.mxu3  ;;  %v482_v46 = vpop.f32.mrf.mxu2 }
 0x1cc   :  { %v483_v29 = vadd.f32 %v2478_v21, %v482_v46 }
 0x1cd   :  { %v434_v48 = vpop.f32.mrf.mxu0  ;;  %v457_v49 = vpop.f32.mrf.mxu1 }
 0x1ce   :  { %v458_v31 = vadd.f32 %v2479_v25, %v457_v49 }
 0x1d3   :  { %v484_v51 = vpop.f32.mrf.mxu2  ;;  %v3029_v52 = vpop.f32.mrf.mxu3 }
 0x1d4   :  { %v508_v40 = vadd.f32 %v2480_v33, %v3029_v52  ;;  %v2493_v51 = vld [vmem:[#allocation8 + $0x14] ss:$0 sm:$0xff] }
 0x1d5   :  { %v459_v54 = vpop.f32.mrf.mxu1  ;;  %v598_v55 = vpop.f32.mrf.mxu0 }
 0x1d6   :  { %v599_v56 = vadd.f32 %v2481_v50, %v598_v55  ;;  %v2492_v50 = vld [vmem:[#allocation8 + $0x13] ss:$0 sm:$0xff] }
 0x1d8   :  { %2291 = vmatpush.xpose.msk.msra.mxu0 %vm1043_vm8, %v599_v56 }
 0x1db   :  { %v509_v61 = vpop.f32.mrf.mxu3  ;;  %v648_v62 = vpop.f32.mrf.mxu2  ;;  %2292 = vmatmul.msk.f32.vlgmr.msra.gmra.mxu0 %vm1043_vm8, %v330_v58  ;;  %v2494_v58 = vld [vmem:[#allocation8 + $0x16] ss:$0 sm:$0xff] }
 0x1dc   :  { %v649_v63 = vadd.f32 %v2482_v57, %v648_v62 }
 0x1dd   :  { %v600_v1 = vpop.f32.mrf.mxu0  ;;  %v623_v2 = vpop.f32.mrf.mxu1 }
 0x1de   :  { %v624_v3 = vadd.f32 %v2483_v59, %v623_v2  ;;  %2295 = vmatpush.xpose.msk.msra.mxu2 %vm1043_vm8, %v649_v63  ;;  %v2495_v59 = vld [vmem:[#allocation8 + $0x15] ss:$0 sm:$0xff]  ;;  %v2496_v2 = vld [vmem:[#allocation8 + $0x17] ss:$0 sm:$0xff] }
 0x1e0   :  { %2293 = vmatpush.xpose.msk.msrb.mxu0 %vm1043_vm8, %v624_v3 }
 0x1e1   :  { %2296 = vmatmul.msk.f32.vlgmr.msra.gmra.mxu2 %vm1043_vm8, %v383_v4 }
 0x1e3   :  { %v650_v9 = vpop.f32.mrf.mxu2  ;;  %v673_v11 = vpop.f32.mrf.mxu3  ;;  %2294 = vmatmul.msk.f32.vlgmr.msrb.gmra.mxu0 %vm1043_vm8, %v358_v6 }
 0x1e4   :  { %v674_v12 = vadd.f32 %v2484_v5, %v673_v11 }
 0x1e5   :  { %v625_v14 = vpop.f32.mrf.mxu1  ;;  %v698_v15 = vpop.f32.mrf.mxu0 }
 0x1e6   :  { %v699_v16 = vadd.f32 %v2485_v7, %v698_v15  ;;  %2297 = vmatpush.xpose.msk.msra.mxu3 %vm1043_vm8, %v674_v12 }
 0x1e8   :  { %2299 = vmatpush.xpose.msk.msra.mxu0 %vm1043_vm8, %v699_v16 }
 0x1e9   :  { %2298 = vmatmul.msk.f32.vlgmr.msra.gmra.mxu3 %vm1043_vm8, %v408_v17 }
 0x1eb   :  { %v675_v22 = vpop.f32.mrf.mxu3  ;;  %v748_v23 = vpop.f32.mrf.mxu2  ;;  %2300 = vmatmul.msk.f32.vlgmr.msra.gmra.mxu0 %vm1043_vm8, %v433_v19 }
 0x1ec   :  { %v749_v24 = vadd.f32 %v2486_v18, %v748_v23 }
 0x1ed   :  { %v700_v26 = vpop.f32.mrf.mxu0  ;;  %v723_v27 = vpop.f32.mrf.mxu1 }
 0x1ee   :  { %v724_v28 = vadd.f32 %v2487_v20, %v723_v27  ;;  %2303 = vmatpush.xpose.msk.msrb.mxu2 %vm1043_vm8, %v749_v24 }
 0x1f0   :  { %2301 = vmatpush.xpose.msk.msra.mxu1 %vm1043_vm8, %v724_v28 }
 0x1f1   :  { %2304 = vmatmul.msk.f32.vlgmr.msrb.gmra.mxu2 %vm1043_vm8, %v483_v29 }
 0x1f3   :  { %v750_v34 = vpop.f32.mrf.mxu2  ;;  %v773_v35 = vpop.f32.mrf.mxu3  ;;  %2302 = vmatmul.msk.f32.vlgmr.msra.gmra.mxu1 %vm1043_vm8, %v458_v31 }
 0x1f4   :  { %v774_v36 = vadd.f32 %v2488_v30, %v773_v35 }
 0x1f5   :  { %v725_v37 = vpop.f32.mrf.mxu1  ;;  %v864_v38 = vpop.f32.mrf.mxu0 }
 0x1f6   :  { %v865_v39 = vadd.f32 %v2489_v32, %v864_v38  ;;  %2305 = vmatpush.xpose.msk.msrb.mxu3 %vm1043_vm8, %v774_v36 }
 0x1f8   :  { %1366 = vmatpush.msrb.mxu0 %v865_v39 }
 0x1f9   :  { %2306 = vmatmul.msk.f32.vlgmr.msrb.gmra.mxu3 %vm1043_vm8, %v508_v40 }
 0x1fb   :  { %v775_v43 = vpop.f32.mrf.mxu3  ;;  %v914_v44 = vpop.f32.mrf.mxu2 }
 0x1fc   :  { %v915_v45 = vadd.f32 %v2490_v41, %v914_v44 }
 0x1fd   :  { %v866_v46 = vpop.f32.mrf.mxu0  ;;  %v889_v48 = vpop.f32.mrf.mxu1 }
 0x1fe   :  { %v890_v49 = vadd.f32 %v2491_v42, %v889_v48  ;;  %1412 = vmatpush.msra.mxu2 %v915_v45 }
 0x200   :  { %1389 = vmatpush.msrb.mxu1 %v890_v49 }
 0x203   :  { %v916_v53 = vpop.f32.mrf.mxu2  ;;  %v939_v54 = vpop.f32.mrf.mxu3 }
 0x204   :  { %v940_v55 = vadd.f32 %v2492_v50, %v939_v54 }
 0x205   :  { %v891_v56 = vpop.f32.mrf.mxu1  ;;  %v964_v52 = vpop.f32.mrf.mxu0 }
 0x206   :  { %v965_v57 = vadd.f32 %v2493_v51, %v964_v52  ;;  %1435 = vmatpush.msra.mxu3 %v940_v55 }
 0x208   :  { %1458 = vmatpush.msra.mxu0 %v965_v57 }
 0x20b   :  { %v941_v60 = vpop.f32.mrf.mxu3  ;;  %v1014_v61 = vpop.f32.mrf.mxu2 }
 0x20c   :  { %v1015_v62 = vadd.f32 %v2494_v58, %v1014_v61 }
 0x20d   :  { %v966_v63 = vpop.f32.mrf.mxu0  ;;  %v989_v0 = vpop.f32.mrf.mxu1 }
 0x20e   :  { %v990_v1 = vadd.f32 %v2495_v59, %v989_v0  ;;  %1504 = vmatpush.msrb.mxu2 %v1015_v62 }
 0x210   :  { %1481 = vmatpush.msra.mxu1 %v990_v1 }
 0x213   :  { %v1016_v3 = vpop.f32.mrf.mxu2  ;;  %v1039_v4 = vpop.f32.mrf.mxu3 }
 0x214   :  { %v1040_v5 = vadd.f32 %v2496_v2, %v1039_v4 }
 0x215   :  { %v991_v6 = vpop.f32.mrf.mxu1 }
 0x216   :  { %1527 = vmatpush.msrb.mxu3 %v1040_v5 }
 0x21b   :  { %v1041_v7 = vpop.f32.mrf.mxu3 }
 0x258   :  { %v1067_v8 = vpop.f32.mrf.mxu0 }
 0x259   :  { %v1252_v9 = vmul.f32 0.35355338, %v1067_v8 }
 0x25b   :  { %v1260_v11 = vsel %vm1043_vm8, %v1252_v9, -inf }
 0x25c   :  { %1261 = vmax.xlane.f32.xlu0 %v1260_v11 }
 0x260   :  { %v1093_v12 = vpop.f32.mrf.mxu0 }
 0x261   :  { %v1253_v13 = vmul.f32 0.35355338, %v1093_v12 }
 0x263   :  { %v1263_v14 = vsel %vm1043_vm8, %v1253_v13, -inf }
 0x264   :  { %v1119_v15 = vpop.f32.mrf.mxu2  ;;  %1264 = vmax.xlane.f32.xlu1 %v1263_v14 }
 0x265   :  { %v1254_v16 = vmul.f32 0.35355338, %v1119_v15 }
 0x267   :  { %v1266_v17 = vsel %vm1043_vm8, %v1254_v16, -inf }
 0x268   :  { %1267 = vmax.xlane.f32.xlu2 %v1266_v17  ;;  %v1171_v18 = vpop.f32.mrf.mxu0 }
 0x269   :  { %v1256_v19 = vmul.f32 0.35355338, %v1171_v18 }
 0x26b   :  { %v1272_v20 = vsel %vm1043_vm8, %v1256_v19, -inf }
 0x26c   :  { %v1145_v21 = vpop.f32.mrf.mxu3  ;;  %1273 = vmax.xlane.f32.xlu1 %v1272_v20 }
 0x26d   :  { %v1255_v22 = vmul.f32 0.35355338, %v1145_v21 }
 0x26f   :  { %v1269_v23 = vsel %vm1043_vm8, %v1255_v22, -inf }
 0x270   :  { %1270 = vmax.xlane.f32.xlu2 %v1269_v23  ;;  %v1197_v27 = vpop.f32.mrf.mxu1 }
 0x271   :  { %v1257_v28 = vmul.f32 0.35355338, %v1197_v27 }
 0x273   :  { %v1275_v31 = vsel %vm1043_vm8, %v1257_v28, -inf }
 0x274   :  { %v1223_v24 = vpop.f32.mrf.mxu2 }
 0x275   :  { %v1258_v25 = vmul.f32 0.35355338, %v1223_v24 }
 0x277   :  { %v1278_v26 = vsel %vm1043_vm8, %v1258_v25, -inf }
 0x278   :  { %1279 = vmax.xlane.f32.xlu2 %v1278_v26 }
 0x27c   :  { %v1249_v29 = vpop.f32.mrf.mxu3 }
 0x27d   :  { %v1259_v30 = vmul.f32 0.35355338, %v1249_v29 }
 0x27f   :  { %v1281_v32 = vsel %vm1043_vm8, %v1259_v30, -inf }
 0x280   :  { %1276 = vmax.xlane.f32.xlu2 %v1275_v31  ;;  %1282 = vmax.xlane.f32.xlu0 %v1281_v32 }
 0x2cf   :  { %v1262_v33 = vpop.xlane.xlu0 %1261 }
 0x2d0   :  { %v1284_v34 = vsub.f32 %v1252_v9, %v1262_v33 }
 0x2d2   :  { %v1292_v35 = vmul.f32 1.442695, %v1284_v34 }
 0x2d4   :  { %2503 = vpow2.f32 %v1292_v35  ;;  %v1540_v35 = vld [vmem:[#allocation10] sm:$0xf] }
 0x2d7   :  { %v1265_v36 = vpop.xlane.xlu1 %1264 }
 0x2d8   :  { %v1285_v41 = vsub.f32 %v1253_v13, %v1265_v36  ;;  %v1553_v36 = vsel %vm1551_vm9, %v1540_v35, 0 }
 0x2da   :  { %v2504_v37 = vpop.eup %2503  ;;  %v1294_v43 = vmul.f32 1.442695, %v1285_v41  ;;  %v1543_v41 = vld [vmem:[#allocation10 + $0xc] sm:$0xf] }
 0x2db   :  { %v1268_v38 = vpop.xlane.xlu2 %1267  ;;  %v1308_v39 = vsel %vm1043_vm8, %v2504_v37, 0.0 }
 0x2dc   :  { %v1286_v40 = vsub.f32 %v1254_v16, %v1268_v38  ;;  %1309 = vadd.xlane.f32.xlu2 %v1308_v39  ;;  %v1541_v39 = vld [vmem:[#allocation10 + $0x4] sm:$0xf] }
 0x2de   :  { %v1296_v42 = vmul.f32 1.442695, %v1286_v40  ;;  %v1572_v40 = vsel %vm1551_vm9, %v1541_v39, 0  ;;  %v2548_v39 = vld [vmem:[#allocation2 + $0x8] sm:$0xff] }
 0x2df   :  { %v1274_v44 = vpop.xlane.xlu1 %1273 }
 0x2e0   :  { %2505 = vpow2.f32 %v1296_v42  ;;  %v1288_v49 = vsub.f32 %v1256_v19, %v1274_v44  ;;  %v1610_v42 = vsel %vm1551_vm9, %v1543_v41, 0 }
 0x2e1   :  { %2507 = vpow2.f32 %v1294_v43  ;;  %v1544_v43 = vld [vmem:[#allocation10 + $0x10] sm:$0xf] }
 0x2e2   :  { %v1300_v53 = vmul.f32 1.442695, %v1288_v49  ;;  %v1629_v44 = vsel %vm1551_vm9, %v1544_v43, 0 }
 0x2e3   :  { %v1271_v45 = vpop.xlane.xlu2 %1270 }
 0x2e4   :  { %v1287_v46 = vsub.f32 %v1255_v22, %v1271_v45 }
 0x2e6   :  { %v2506_v48 = vpop.eup %2505  ;;  %v1298_v50 = vmul.f32 1.442695, %v1287_v46 }
 0x2e7   :  { %v1314_v51 = vsel %vm1043_vm8, %v2506_v48, 0.0  ;;  %v2508_v55 = vpop.eup %2507 }
 0x2e8   :  { %2509 = vpow2.f32 %v1298_v50  ;;  %1315 = vadd.xlane.f32.xlu0 %v1314_v51  ;;  %v1311_v58 = vsel %vm1043_vm8, %v2508_v55, 0.0  ;;  %v1545_v50 = vld [vmem:[#allocation10 + $0x14] sm:$0xf] }
 0x2e9   :  { %2511 = vpow2.f32 %v1300_v53  ;;  %v1648_v51 = vsel %vm1551_vm9, %v1545_v50, 0  ;;  %v1547_v53 = vld [vmem:[#allocation10 + $0x1c] sm:$0xf] }
 0x2eb   :  { %v1280_v54 = vpop.xlane.xlu2 %1279 }
 0x2ec   :  { %v1290_v56 = vsub.f32 %v1258_v25, %v1280_v54  ;;  %v1686_v54 = vsel %vm1551_vm9, %v1547_v53, 0 }
 0x2ee   :  { %v2510_v52 = vpop.eup %2509  ;;  %v1304_v57 = vmul.f32 1.442695, %v1290_v56 }
 0x2ef   :  { %v1317_v59 = vsel %vm1043_vm8, %v2510_v52, 0.0  ;;  %v2512_v62 = vpop.eup %2511 }
 0x2f0   :  { %2513 = vpow2.f32 %v1304_v57  ;;  %1312 = vadd.xlane.f32.xlu0 %v1311_v58  ;;  %1318 = vadd.xlane.f32.xlu1 %v1317_v59  ;;  %v1320_v5 = vsel %vm1043_vm8, %v2512_v62, 0.0 }
 0x2f3   :  { %v1277_v60 = vpop.xlane.xlu2 %1276  ;;  %v1283_v61 = vpop.xlane.xlu0 %1282 }
 0x2f4   :  { %v1289_v63 = vsub.f32 %v1257_v28, %v1277_v60  ;;  %v1291_v0 = vsub.f32 %v1259_v30, %v1283_v61 }
 0x2f6   :  { %v2514_v1 = vpop.eup %2513  ;;  %v1302_v2 = vmul.f32 1.442695, %v1289_v63  ;;  %v1306_v3 = vmul.f32 1.442695, %v1291_v0 }
 0x2f7   :  { %v1326_v4 = vsel %vm1043_vm8, %v2514_v1, 0.0 }
 0x2f8   :  { %2515 = vpow2.f32 %v1302_v2  ;;  %1327 = vadd.xlane.f32.xlu1 %v1326_v4  ;;  %1321 = vadd.xlane.f32.xlu0 %v1320_v5 }
 0x2f9   :  { %2517 = vpow2.f32 %v1306_v3 }
 0x2fe   :  { %v2516_v6 = vpop.eup %2515 }
 0x2ff   :  { %v2518_v7 = vpop.eup %2517  ;;  %v1323_v8 = vsel %vm1043_vm8, %v2516_v6, 0.0 }
 0x300   :  { %v1329_v9 = vsel %vm1043_vm8, %v2518_v7, 0.0  ;;  %1324 = vadd.xlane.f32.xlu1 %v1323_v8 }
 0x301   :  { %1330 = vadd.xlane.f32.xlu2 %v1329_v9 }
 0x34f   :  { %v1310_v11 = vpop.xlane.xlu2 %1309 }
 0x350   :  { %2519 = vrcp.f32 %v1310_v11 }
 0x356   :  { %v2520_v12 = vpop.eup %2519 }
 0x357   :  { %v1340_v13 = vmul.f32 %v2520_v12, %v2504_v37  ;;  %v1542_v37 = vld [vmem:[#allocation10 + $0x8] sm:$0xf] }
 0x358   :  { %v1591_v38 = vsel %vm1551_vm9, %v1542_v37, 0 }
 0x359   :  { %2307 = vmatmul.msk.f32.vlgmr.msrb.gmra.mxu0 %vm1043_vm8, %v1340_v13 }
 0x35a   :  { %1562 = vmatpush.bf16.msrb.mxu0 %v1553_v36 }
 0x35b   :  { %v1316_v14 = vpop.xlane.xlu0 %1315 }
 0x35c   :  { %2521 = vrcp.f32 %v1316_v14 }
 0x362   :  { %v2522_v15 = vpop.eup %2521 }
 0x363   :  { %v1342_v16 = vmul.f32 %v2522_v15, %v2506_v48  ;;  %v1313_v17 = vpop.xlane.xlu0 %1312  ;;  %v1319_v18 = vpop.xlane.xlu1 %1318  ;;  %v1546_v48 = vld [vmem:[#allocation10 + $0x18] sm:$0xf] }
 0x364   :  { %2523 = vrcp.f32 %v1313_v17  ;;  %v1667_v49 = vsel %vm1551_vm9, %v1546_v48, 0 }
 0x365   :  { %2525 = vrcp.f32 %v1319_v18  ;;  %2309 = vmatmul.msk.f32.vlgmr.msra.gmra.mxu2 %vm1043_vm8, %v1342_v16 }
 0x366   :  { %1600 = vmatpush.bf16.msra.mxu2 %v1591_v38 }
 0x36a   :  { %v2524_v19 = vpop.eup %2523 }
 0x36b   :  { %v2526_v20 = vpop.eup %2525  ;;  %v1341_v21 = vmul.f32 %v2524_v19, %v2508_v55  ;;  %v1322_v22 = vpop.xlane.xlu0 %1321 }
 0x36c   :  { %v1328_v23 = vpop.xlane.xlu1 %1327  ;;  %v1343_v24 = vmul.f32 %v2526_v20, %v2510_v52  ;;  %2527 = vrcp.f32 %v1322_v22 }
 0x36d   :  { %2529 = vrcp.f32 %v1328_v23  ;;  %2308 = vmatmul.msk.f32.vlgmr.msrb.gmra.mxu1 %vm1043_vm8, %v1341_v21 }
 0x36e   :  { %2310 = vmatmul.msk.f32.vlgmr.msra.gmra.mxu3 %vm1043_vm8, %v1343_v24  ;;  %1581 = vmatpush.bf16.msrb.mxu1 %v1572_v40  ;;  %v1717_v24 = vperm.slane %v2971_v47, 2 }
 0x36f   :  { %1619 = vmatpush.bf16.msra.mxu3 %v1610_v42 }
 0x372   :  { %v2528_v25 = vpop.eup %2527 }
 0x373   :  { %v2530_v26 = vpop.eup %2529  ;;  %v1344_v27 = vmul.f32 %v2528_v25, %v2512_v62 }
 0x374   :  { %v1325_v28 = vpop.xlane.xlu1 %1324  ;;  %v1346_v29 = vmul.f32 %v2530_v26, %v2514_v1  ;;  %v1331_v30 = vpop.xlane.xlu2 %1330 }
 0x375   :  { %2531 = vrcp.f32 %v1325_v28  ;;  %2311 = vmatmul.msk.f32.vlgmr.msra.gmra.mxu0 %vm1043_vm8, %v1344_v27  ;;  %v2547_v27 = vld [vmem:[#allocation2] sm:$0xff] }
 0x376   :  { %2533 = vrcp.f32 %v1331_v30  ;;  %2313 = vmatmul.msk.f32.vlgmr.msrb.gmra.mxu2 %vm1043_vm8, %v1346_v29  ;;  %1638 = vmatpush.bf16.msra.mxu0 %v1629_v44 }
 0x377   :  { %1676 = vmatpush.bf16.msrb.mxu2 %v1667_v49 }
 0x37b   :  { %v2532_v31 = vpop.eup %2531 }
 0x37c   :  { %v2534_v32 = vpop.eup %2533  ;;  %v1345_v33 = vmul.f32 %v2532_v31, %v2516_v6 }
 0x37d   :  { %v1347_v34 = vmul.f32 %v2534_v32, %v2518_v7 }
 0x37e   :  { %2312 = vmatmul.msk.f32.vlgmr.msra.gmra.mxu1 %vm1043_vm8, %v1345_v33 }
 0x37f   :  { %2314 = vmatmul.msk.f32.vlgmr.msrb.gmra.mxu3 %vm1043_vm8, %v1347_v34  ;;  %1657 = vmatpush.bf16.msra.mxu1 %v1648_v51 }
 0x380   :  { %1695 = vmatpush.bf16.msrb.mxu3 %v1686_v54 }
 0x3d6   :  { %v1368_v45 = vpop.f32.mrf.mxu0 }
 0x3d7   :  { %v1532_v46 = vpack.c.bf16 %v1368_v45, %v1368_v45 }
 0x3d9   :  { %2315 = vmatmul.msk.bf16.vlgmr.msrb.gmra.mxu0 %vm1043_vm8, %v1532_v46 }
 0x3e8   :  { %v1414_v55 = vpop.f32.mrf.mxu2 }
 0x3e9   :  { %v1534_v56 = vpack.c.bf16 %v1414_v55, %v1414_v55 }
 0x3ea   :  { %v1391_v52 = vpop.f32.mrf.mxu1 }
 0x3eb   :  { %v1533_v57 = vpack.c.bf16 %v1391_v52, %v1391_v52  ;;  %2317 = vmatmul.msk.bf16.vlgmr.msra.gmra.mxu2 %vm1043_vm8, %v1534_v56  ;;  %v2439_v56 = vld [vmem:[#allocation11 + $0x8] sm:$0xff] }
 0x3ec   :  { %1797 = vmatpush.bf16.msrb.mxu0 %v2439_v56 }
 0x3ed   :  { %2316 = vmatmul.msk.bf16.vlgmr.msrb.gmra.mxu1 %vm1043_vm8, %v1533_v57 }
 0x3f1   :  { %v1437_v58 = vpop.f32.mrf.mxu3 }
 0x3f2   :  { %v1535_v59 = vpack.c.bf16 %v1437_v58, %v1437_v58  ;;  %v1460_v60 = vpop.f32.mrf.mxu0  ;;  %v2438_v58 = vld [vmem:[#allocation11] sm:$0xff] }
 0x3f3   :  { %v1536_v61 = vpack.c.bf16 %v1460_v60, %v1460_v60  ;;  %1798 = vmatpush.bf16.msrb.mxu0 %v2438_v58  ;;  %v2449_v58 = vld [vmem:[#allocation14 + $0x8] sm:$0xff] }
 0x3f4   :  { %2318 = vmatmul.msk.bf16.vlgmr.msra.gmra.mxu3 %vm1043_vm8, %v1535_v59  ;;  %1967 = vmatpush.bf16.msra.mxu2 %v2449_v58 }
 0x3f5   :  { %2319 = vmatmul.msk.bf16.vlgmr.msra.gmra.mxu0 %vm1043_vm8, %v1536_v61 }
 0x3f9   :  { %v1506_v62 = vpop.f32.mrf.mxu2 }
 0x3fa   :  { %v1538_v63 = vpack.c.bf16 %v1506_v62, %v1506_v62 }
 0x3fb   :  { %v1483_v0 = vpop.f32.mrf.mxu1 }
 0x3fc   :  { %v1537_v1 = vpack.c.bf16 %v1483_v0, %v1483_v0  ;;  %2321 = vmatmul.msk.bf16.vlgmr.msrb.gmra.mxu2 %vm1043_vm8, %v1538_v63 }
 0x3fe   :  { %2320 = vmatmul.msk.bf16.vlgmr.msra.gmra.mxu1 %vm1043_vm8, %v1537_v1 }
 0x402   :  { %v1529_v2 = vpop.f32.mrf.mxu3 }
 0x403   :  { %v1539_v3 = vpack.c.bf16 %v1529_v2, %v1529_v2 }
 0x405   :  { %2322 = vmatmul.msk.bf16.vlgmr.msrb.gmra.mxu3 %vm1043_vm8, %v1539_v3 }
 0x456   :  { %v1564_v4 = vpop.f32.mrf.mxu0 }
 0x457   :  { %v1701_v16 = vsel %vm181_vm0, %v1564_v4, 0.0 }
 0x45e   :  { %v1566_v5 = vpop.f32.mrf.mxu0 }
 0x46a   :  { %v1583_v6 = vpop.f32.mrf.mxu1 }
 0x46b   :  { %v1708_v29 = vsel %vm181_vm0, %v1583_v6, 0.0 }
 0x46e   :  { %v1602_v7 = vpop.f32.mrf.mxu2 }
 0x46f   :  { %v1702_v13 = vsel %vm181_vm0, %v1602_v7, 0.0 }
 0x470   :  { %v1703_v18 = vadd.f32 %v1702_v13, %v1701_v16 }
 0x472   :  { %v1585_v8 = vpop.f32.mrf.mxu1  ;;  %v1640_v9 = vpop.f32.mrf.mxu0 }
 0x473   :  { %v1704_v17 = vsel %vm181_vm0, %v1640_v9, 0.0 }
 0x474   :  { %v1705_v19 = vadd.f32 %v1704_v17, %v1703_v18 }
 0x476   :  { %v1604_v11 = vpop.f32.mrf.mxu2 }
 0x477   :  { %v1621_v12 = vpop.f32.mrf.mxu3 }
 0x478   :  { %v1709_v25 = vsel %vm181_vm0, %v1621_v12, 0.0 }
 0x479   :  { %v1710_v31 = vadd.f32 %v1709_v25, %v1708_v29  ;;  %v2444_v25 = vld [vmem:[#allocation13 + $0x20] sm:$0xff] }
 0x47a   :  { %v1642_v14 = vpop.f32.mrf.mxu0 }
 0x47b   :  { %v1659_v15 = vpop.f32.mrf.mxu1 }
 0x47c   :  { %v1711_v30 = vsel %vm181_vm0, %v1659_v15, 0.0  ;;  %v1767_v15 = vperm.slane %v2971_v47, 4 }
 0x47d   :  { %v1712_v33 = vadd.f32 %v1711_v30, %v1710_v31  ;;  %v2440_v30 = vld [vmem:[#allocation13] sm:$0xff] }
 0x47f   :  { %v1623_v20 = vpop.f32.mrf.mxu3  ;;  %v1678_v21 = vpop.f32.mrf.mxu2 }
 0x480   :  { %v1706_v22 = vsel %vm181_vm0, %v1678_v21, 0.0 }
 0x481   :  { %v1707_v23 = vadd.f32 %v1706_v22, %v1705_v19  ;;  %v2447_v22 = vld [vmem:[#allocation13 + $0x38] sm:$0xff] }
 0x482   :  { %1888 = vmatpush.bf16.msrb.mxu1 %v2447_v22 }
 0x483   :  { %v1661_v26 = vpop.f32.mrf.mxu1  ;;  %v1715_v28 = vadd.f32 %v2547_v27, %v1707_v23  ;;  %v2446_v23 = vld [vmem:[#allocation13 + $0x30] sm:$0xff] }
 0x484   :  { %v2443_v26 = vld [vmem:[#allocation13 + $0x18] sm:$0xff]  ;;  %v2442_v27 = vld [vmem:[#allocation13 + $0x10] sm:$0xff] }
 0x485   :  { %v3096_v32 = vadd.f32 %v1717_v24, %v1715_v28  ;;  %v3116_v28 = vld [vmem:[#allocation5] sm:$0xff] }
 0x486   :  { %1889 = vmatpush.bf16.msrb.mxu1 %v2446_v23  ;;  %v1775_v29 = vperm.slane %v3116_v28, 5 }
 0x487   :  { %v1680_v34 = vpop.f32.mrf.mxu2  ;;  %v1720_v36 = vsel %vm181_vm0, %v3096_v32, 0.0 }
 0x488   :  { %v1697_v35 = vpop.f32.mrf.mxu3  ;;  %1721 = vadd.xlane.f32.xlu2 %v1720_v36 }
 0x489   :  { %v1713_v37 = vsel %vm181_vm0, %v1697_v35, 0.0 }
 0x48a   :  { %v1714_v38 = vadd.f32 %v1713_v37, %v1712_v33 }
 0x48c   :  { %v1716_v40 = vadd.f32 %v2548_v39, %v1714_v38 }
 0x48e   :  { %v3101_v41 = vadd.f32 %v1717_v24, %v1716_v40  ;;  %v2445_v24 = vld [vmem:[#allocation13 + $0x28] sm:$0xff] }
 0x48f   :  { %1890 = vmatpush.bf16.msrb.mxu1 %v2445_v24 }
 0x490   :  { %v1699_v42 = vpop.f32.mrf.mxu3  ;;  %v1723_v43 = vsel %vm181_vm0, %v3101_v41, 0.0 }
 0x491   :  { %1724 = vadd.xlane.f32.xlu0 %v1723_v43 }
 0x493   :  { %1891 = vmatpush.bf16.msrb.mxu1 %v2444_v25 }
 0x497   :  { %1892 = vmatpush.bf16.msrb.mxu1 %v2443_v26 }
 0x49b   :  { %1893 = vmatpush.bf16.msrb.mxu1 %v2442_v27 }
 0x4fb   :  { %v1722_v44 = vpop.xlane.xlu2 %1721 }
 0x4fc   :  { %v1726_v45 = vmul.f32 %v1722_v44, %v2955_v10 }
 0x4fe   :  { %v1728_v46 = vsub.f32 %v3096_v32, %v1726_v45 }
 0x500   :  { %v1730_v48 = vmul.f32 %v1728_v46, %v1728_v46 }
 0x502   :  { %v1732_v49 = vsel %vm181_vm0, %v1730_v48, 0.0 }
 0x503   :  { %1733 = vadd.xlane.f32.xlu1 %v1732_v49 }
 0x504   :  { %v1725_v50 = vpop.xlane.xlu0 %1724 }
 0x505   :  { %v1727_v51 = vmul.f32 %v1725_v50, %v2955_v10 }
 0x507   :  { %v1729_v53 = vsub.f32 %v3101_v41, %v1727_v51 }
 0x509   :  { %v1731_v54 = vmul.f32 %v1729_v53, %v1729_v53 }
 0x50b   :  { %v1735_v55 = vsel %vm181_vm0, %v1731_v54, 0.0 }
 0x50c   :  { %1736 = vadd.xlane.f32.xlu2 %v1735_v55 }
 0x576   :  { %v1734_v52 = vpop.xlane.xlu1 %1733 }
 0x577   :  { %v1738_v57 = vmul.f32 %v1734_v52, %v2955_v10 }
 0x579   :  { %v1740_v59 = vadd.f32 1e-05, %v1738_v57  ;;  %v2844_v57 = vmov 8.0  }
 0x57b   :  { %2535 = vrsqrt.f32 %v1740_v59  ;;  %vm1748_vm11 = vweird.f32 %v1740_v59 }
 0x57f   :  { %v1737_v60 = vpop.xlane.xlu2 %1736 }
 0x580   :  { %v1739_v61 = vmul.f32 %v1737_v60, %v2955_v10  ;;  %v1764_v10 = vperm.slane %v2971_v47, 3  ;;  %v2441_v47 = vld [vmem:[#allocation13 + $0x8] sm:$0xff]  ;;  %v1904_v60 = vperm.slane %v3116_v28, 6 }
 0x581   :  { %v2536_v62 = vpop.eup %2535  ;;  %1894 = vmatpush.bf16.msrb.mxu1 %v2441_v47 }
 0x582   :  { %v1741_v63 = vadd.f32 1e-05, %v1739_v61  ;;  %v1743_v0 = vmul.f32 %v2536_v62, %v1740_v59  ;;  %vm1749_vm10 = vweird.f32 %v2536_v62  ;;  %v2448_v59 = vld [vmem:[#allocation14] sm:$0xff] }
 0x583   :  { %vm1750_vm12 = vmor %vm1748_vm11, %vm1749_vm10  ;;  %1968 = vmatpush.bf16.msra.mxu2 %v2448_v59 }
 0x584   :  { %2537 = vrsqrt.f32 %v1741_v63  ;;  %v1744_v1 = vmul.f32 %v2536_v62, %v1743_v0  ;;  %vm1758_vm14 = vweird.f32 %v1741_v63 }
 0x585   :  { %1895 = vmatpush.bf16.msrb.mxu1 %v2440_v30  ;;  %v2452_v30 = vld [vmem:[#allocation16 + $0x10] sm:$0xff] }
 0x586   :  { %v1745_v2 = vmul.f32 0.5, %v1744_v1 }
 0x588   :  { %v1746_v3 = vsub.f32 1.5, %v1745_v2 }
 0x58a   :  { %v2538_v4 = vpop.eup %2537  ;;  %v1747_v5 = vmul.f32 %v2536_v62, %v1746_v3 }
 0x58b   :  { %v1753_v6 = vmul.f32 %v2538_v4, %v1741_v63  ;;  %vm1759_vm13 = vweird.f32 %v2538_v4 }
 0x58c   :  { %v1751_v8 = vsel %vm1750_vm12, %v2536_v62, %v1747_v5  ;;  %vm1760_vm15 = vmor %vm1758_vm14, %vm1759_vm13 }
 0x58d   :  { %v1754_v7 = vmul.f32 %v2538_v4, %v1753_v6  ;;  %v1762_v12 = vmul.f32 %v1751_v8, %v1728_v46 }
 0x58f   :  { %v1755_v9 = vmul.f32 0.5, %v1754_v7  ;;  %v1765_v16 = vmul.f32 %v1764_v10, %v1762_v12 }
 0x591   :  { %v1756_v11 = vsub.f32 1.5, %v1755_v9  ;;  %v1768_v19 = vadd.f32 %v1767_v15, %v1765_v16 }
 0x593   :  { %v1757_v13 = vmul.f32 %v2538_v4, %v1756_v11 }
 0x595   :  { %v1761_v14 = vsel %vm1760_vm15, %v2538_v4, %v1757_v13 }
 0x596   :  { %v1763_v17 = vmul.f32 %v1761_v14, %v1729_v53 }
 0x598   :  { %v1766_v18 = vmul.f32 %v1764_v10, %v1763_v17 }
 0x59a   :  { %v1769_v20 = vadd.f32 %v1767_v15, %v1766_v18 }
 0x59c   :  { %v1770_v21 = vpack.c.bf16 %v1769_v20, %v1768_v19 }
 0x59e   :  { %2331 = vmatmul.msk.bf16.vlgmr.msrb.gmra.mxu0 %vm181_vm0, %v1770_v21 }
 0x61b   :  { %v1800_v31 = vpop.f32.mrf.mxu0 }
 0x61c   :  { %v1801_v33 = vadd.f32 %v1800_v31, %v1775_v29  ;;  %v2451_v31 = vld [vmem:[#allocation16 + $0x8] sm:$0xff] }
 0x61e   :  { %v1805_v34 = vmul.f32 %v1801_v33, %v1801_v33 }
 0x620   :  { %v1807_v35 = vmul.f32 %v1805_v34, %v1801_v33  ;;  %v1938_v34 = vperm.slane %v3116_v28, 7  ;;  %v178_v28 = vld [vmem:[#allocation5 + $0x8] sm:$0xff] }
 0x622   :  { %v1809_v36 = vmul.f32 0.044715, %v1807_v35 }
 0x623   :  { %v1802_v37 = vpop.f32.mrf.mxu0 }
 0x624   :  { %v1811_v38 = vadd.f32 %v1809_v36, %v1801_v33  ;;  %v1803_v39 = vadd.f32 %v1802_v37, %v1775_v29  ;;  %v2453_v29 = vld [vmem:[#allocation16 + $0x18] sm:$0xff] }
 0x625   :  { %2025 = vmatpush.bf16.msra.mxu3 %v2453_v29 }
 0x626   :  { %v1813_v40 = vmul.f32 0.7978846, %v1811_v38  ;;  %v1806_v42 = vmul.f32 %v1803_v39, %v1803_v39 }
 0x628   :  { %v1808_v43 = vmul.f32 %v1806_v42, %v1803_v39  ;;  %2539 = vtanh.f32 %v1813_v40 }
 0x629   :  { %2026 = vmatpush.bf16.msra.mxu3 %v2452_v30 }
 0x62a   :  { %v1810_v44 = vmul.f32 0.044715, %v1808_v43 }
 0x62c   :  { %v1812_v45 = vadd.f32 %v1810_v44, %v1803_v39 }
 0x62d   :  { %2027 = vmatpush.bf16.msra.mxu3 %v2451_v31 }
 0x62e   :  { %v1814_v46 = vmul.f32 0.7978846, %v1812_v45  ;;  %v2540_v48 = vpop.eup %2539 }
 0x62f   :  { %v1817_v49 = vadd.f32 1.0, %v2540_v48 }
 0x630   :  { %2541 = vtanh.f32 %v1814_v46 }
 0x631   :  { %v1819_v51 = vmul.f32 0.5, %v1817_v49  ;;  %2543 = vrcp.f32 %v2844_v57 }
 0x633   :  { %v1821_v55 = vmul.f32 %v1819_v51, %v1801_v33  ;;  %v2450_v33 = vld [vmem:[#allocation16] sm:$0xff] }
 0x634   :  { %2028 = vmatpush.bf16.msra.mxu3 %v2450_v33 }
 0x636   :  { %v2542_v50 = vpop.eup %2541 }
 0x637   :  { %v1818_v53 = vadd.f32 1.0, %v2542_v50  ;;  %v2544_v61 = vpop.eup %2543  ;;  %v1992_v50 = vperm.slane %v178_v28, 0 }
 0x638   :  { %v1924_v1 = vmul.f32 8.0, %v2544_v61  ;;  %vm1928_vm1 = vweird.f32 %v2544_v61 }
 0x639   :  { %v1820_v54 = vmul.f32 0.5, %v1818_v53 }
 0x63a   :  { %v1925_v4 = vsub.f32 1.0, %v1924_v1 }
 0x63b   :  { %v1822_v56 = vmul.f32 %v1820_v54, %v1803_v39 }
 0x63c   :  { %v1926_v9 = vmul.f32 %v2544_v61, %v1925_v4 }
 0x63d   :  { %v1823_v52 = vpack.c.bf16 %v1822_v56, %v1821_v55 }
 0x63e   :  { %v1927_v14 = vadd.f32 %v2544_v61, %v1926_v9 }
 0x63f   :  { %1896 = vmatmul.bf16.vlgmr.msrb.gmra.mxu1 %v1823_v52 }
 0x640   :  { %v1929_v18 = vsel %vm1928_vm1, %v2544_v61, %v1927_v14 }
 0x6bc   :  { %v1897_v62 = vpop.f32.mrf.mxu1 }
 0x6bd   :  { %v1902_v63 = vadd.f32 %v1897_v62, %v3096_v32 }
 0x6bf   :  { %v1905_v0 = vadd.f32 %v1904_v60, %v1902_v63 }
 0x6c1   :  { %v1909_v2 = vsel %vm181_vm0, %v1905_v0, 0.0  ;;  %1907 = vst.msk [vmem:[#allocation17] sm:$0xff] %vm181_vm0, %v1905_v0 }
 0x6c2   :  { %v1910_v3 = vrot.slane %v1909_v2, 4 }
 0x6c4   :  { %v1911_v5 = vadd.f32 %v1910_v3, %v1909_v2  ;;  %v1899_v6 = vpop.f32.mrf.mxu1 }
 0x6c5   :  { %v1903_v7 = vadd.f32 %v1899_v6, %v3101_v41 }
 0x6c6   :  { %v1912_v8 = vrot.slane %v1911_v5, 2 }
 0x6c7   :  { %v1906_v11 = vadd.f32 %v1904_v60, %v1903_v7 }
 0x6c8   :  { %v1913_v10 = vadd.f32 %v1912_v8, %v1911_v5 }
 0x6c9   :  { %v1916_v12 = vsel %vm181_vm0, %v1906_v11, 0.0  ;;  %1908 = vst.msk [vmem:[#allocation17 + $0x8] sm:$0xff] %vm181_vm0, %v1906_v11 }
 0x6ca   :  { %v1914_v32 = vrot.slane %v1913_v10, 1  ;;  %v1917_v13 = vrot.slane %v1916_v12, 4  ;;  %2048 = dma.vmem_to_hbm [thread:$0]  %s2041_s13, 256, %s2043_s5, [#allocation4], %s2829_s21, %s2829_s21, %s2830_s22  }
 0x6cc   :  { %v1918_v15 = vadd.f32 %v1917_v13, %v1916_v12  ;;  %v1915_v16 = vadd.f32 %v1914_v32, %v1913_v10 }
 0x6ce   :  { %v1919_v17 = vrot.slane %v1918_v15, 2  ;;  %v1930_v20 = vmul.f32 %v1929_v18, %v1915_v16 }
 0x6d0   :  { %v1920_v19 = vadd.f32 %v1919_v17, %v1918_v15  ;;  %v1932_v22 = vpack.c.bf16 %v1930_v20, %v1930_v20 }
 0x6d2   :  { %v1921_v21 = vrot.slane %v1920_v19, 1  ;;  %v1941_v25 = vunpack.c.l.b16 %v1932_v22 }
 0x6d4   :  { %v1922_v41 = vadd.f32 %v1921_v21, %v1920_v19 }
 0x6d6   :  { %v1931_v23 = vmul.f32 %v1929_v18, %v1922_v41 }
 0x6d8   :  { %v1933_v24 = vpack.c.bf16 %v1931_v23, %v1931_v23 }
 0x6da   :  { %v1942_v26 = vunpack.c.l.b16 %v1933_v24 }
 0x6dc   :  { %v1944_v27 = vsel %vm1943_vm2, %v1942_v26, %v1941_v25 }
 0x6dd   :  { %v1945_v47 = vpack.c.b16 %v1944_v27, %v1944_v27 }
 0x6df   :  { %2372 = vmatmul.msk.bf16.vlgmr.msra.gmra.mxu2 %vm181_vm0, %v1945_v47  ;;  %vm2017_vm0 = vcmask 523264  }
 0x762   :  { %v1970_v35 = vpop.f32.mrf.mxu2 }
 0x763   :  { %v1971_v36 = vadd.f32 %v1970_v35, %v1938_v34 }
 0x765   :  { %v1974_v37 = vmul.f32 %v1971_v36, %v1971_v36 }
 0x767   :  { %v1975_v38 = vmul.f32 %v1974_v37, %v1971_v36 }
 0x769   :  { %v1976_v39 = vmul.f32 0.044715, %v1975_v38 }
 0x76a   :  { %v1972_v40 = vpop.f32.mrf.mxu2 }
 0x76b   :  { %v1977_v42 = vadd.f32 %v1976_v39, %v1971_v36 }
 0x76d   :  { %v1978_v43 = vmul.f32 0.7978846, %v1977_v42 }
 0x76f   :  { %2545 = vtanh.f32 %v1978_v43 }
 0x775   :  { %v2546_v44 = vpop.eup %2545 }
 0x776   :  { %v1980_v45 = vadd.f32 1.0, %v2546_v44 }
 0x778   :  { %v1981_v46 = vmul.f32 0.5, %v1980_v45 }
 0x77a   :  { %v1982_v48 = vmul.f32 %v1981_v46, %v1971_v36 }
 0x77c   :  { %v1983_v49 = vpack.c.bf16 %v1982_v48, %v1982_v48 }
 0x77e   :  { %2389 = vmatmul.msk.bf16.vlgmr.msra.gmra.mxu3 %vm2017_vm0, %v1983_v49 }
 0x801   :  { %v2030_v51 = vpop.f32.mrf.mxu3 }
 0x802   :  { %v2031_v53 = vadd.f32 %v2030_v51, %v1992_v50 }
 0x804   :  { %2035 = vst.msk [vmem:[#allocation18] sm:$0x3] %vm2034_vm3, %v2031_v53 }
 0x805   :  { %2059 = dma.vmem_to_hbm [thread:$0]  %s2055_s19, 32, %s2057_s24, [#allocation19]  }
 0x809   :  { %v2032_v54 = vpop.f32.mrf.mxu3 }
 0x80a   :  { %2824 = dma.done.wait [#allocation4], 256  }
 0x80b   :  { %2825 = vsyncadd [#allocation4], 4294967040 }
 0x80c   :  { %2826 = dma.done.wait [#allocation19], 32  }
 0x80d   :  { %2827 = vsyncadd [#allocation19], 4294967264 }
 0x80e   :  { %2068 = vsyncpa [#allocation3], 1 }
 0x80f   :  { %2069 = vsyncpa [#allocation6], 1 }
 0x810   :  { %2070 = vsyncpa [#allocation9], 1 }
 0x811   :  { %2071 = vsyncpa [#allocation12], 1 }
 0x812   :  { %2072 = vsyncpa [#allocation15], 1 }
 0x813   :  { %2073 = vsyncpa [#allocation4], 1 }
 0x814   :  { %2074 = vsyncpa [#allocation19], 1 }

</bundles_post_ra>
